<compile_context>
chip_gen: v5e
topology: v5e:2x2
jax: 0.10.0
libtpu: 0.0.40
codegen_flags: <defaults>
</compile_context>

<pallas_src>
import functools
import math

import jax
import jax.numpy as jnp
from jax.experimental import pallas as pl
from jax.experimental.pallas import tpu as pltpu

EPS = 1e-5


def _vmem_limit_bytes():
    """Scoped-VMEM limit sized per generation (v7x: 64 MiB phys -> 48 MiB,
    v5e/v6e: 128 MiB -> 96 MiB); safe fallback if the query is unavailable."""
    try:
        return int(pltpu.get_tpu_info().vmem_capacity_bytes * 3 // 4)
    except Exception:
        return 48 * 1024 * 1024


def _nbytes(*arrs):
    return int(sum(math.prod(a.shape) * jnp.dtype(a.dtype).itemsize
                   for a in arrs))


def _taps(stride):
    """(phase, dh, dw) for each of the 9 taps of a 3x3 / stride-s conv on the
    phase-decomposed, halo-padded input."""
    s = stride
    return tuple(((kh % s) * s + (kw % s), kh // s, kw // s)
                 for kh in range(3) for kw in range(3))


# ----------------------------- Pallas kernels --------------------------------
def _write_conv_out(acc, y_ref, s_ref):
    """Store the conv output (rounded to the storage dtype) plus per-channel
    [sum; sum_sq] computed from the *rounded* values, so BN later normalizes
    exactly what it reads back."""
    yq = acc.astype(y_ref.dtype)
    y_ref[0] = yq.reshape(y_ref.shape[1:])
    yf = yq.astype(jnp.float32)
    s_ref[0, 0:1, :] = jnp.sum(yf, axis=0, keepdims=True)
    s_ref[0, 1:2, :] = jnp.sum(yf * yf, axis=0, keepdims=True)


def _conv3x3_stats_kernel(x_ref, w_ref, y_ref, s_ref, *, taps, ho, wo):
    """conv1: in-kernel im2col 3x3 conv (stride folded into the phase images)
    plus per-image BN statistics.  One grid step = one batch image."""
    cin = x_ref.shape[-1]
    cout = w_ref.shape[-1]
    mdt = w_ref.dtype
    acc = jnp.zeros((ho * wo, cout), jnp.float32)
    for k, (ph, dh, dw) in enumerate(taps):
        xs = x_ref[ph, dh:dh + ho, dw:dw + wo, :].reshape(ho * wo, cin)
        acc = acc + jnp.dot(xs.astype(mdt), w_ref[k],
                            preferred_element_type=jnp.float32)
    _write_conv_out(acc, y_ref, s_ref)


def _bn_relu_conv3x3_kernel(*refs, ho, wo, has_proj):
    """Fused: BN1(scale/shift)+ReLU on y1 -> zero-halo VMEM scratch ->
    in-kernel im2col 3x3 conv (w2) + BN2 statistics; optionally the 1x1
    projection-shortcut matmul + its BN statistics on the same grid step."""
    if has_proj:
        (y1_ref, sc1_ref, sh1_ref, w2_ref, xs_ref, wsc_ref,
         y2_ref, s2_ref, ysc_ref, ssc_ref, o1_scr) = refs
    else:
        (y1_ref, sc1_ref, sh1_ref, w2_ref,
         y2_ref, s2_ref, o1_scr) = refs

    planes = w2_ref.shape[-1]
    mdt = w2_ref.dtype

    # BN1 + ReLU written into the interior of a zero-haloed scratch.  The
    # interior starts at column 8 so the big store stays sublane-aligned; the
    # tap reads use small static (possibly unaligned) offsets only.
    o1_scr[...] = jnp.zeros_like(o1_scr)
    sc1 = sc1_ref[...].reshape(1, 1, planes)
    sh1 = sh1_ref[...].reshape(1, 1, planes)
    o1 = jnp.maximum(y1_ref[0].astype(jnp.float32) * sc1 + sh1, 0.0)
    o1_scr[1:1 + ho, 8:8 + wo, :] = o1

    acc = jnp.zeros((ho * wo, planes), jnp.float32)
    for kh in range(3):
        for kw in range(3):
            xs = o1_scr[kh:kh + ho, 7 + kw:7 + kw + wo, :]
            xs = xs.reshape(ho * wo, planes).astype(mdt)
            acc = acc + jnp.dot(xs, w2_ref[kh * 3 + kw],
                                preferred_element_type=jnp.float32)
    _write_conv_out(acc, y2_ref, s2_ref)

    if has_proj:
        cin = xs_ref.shape[-1]
        a = jnp.dot(xs_ref[0].reshape(ho * wo, cin).astype(mdt), wsc_ref[...],
                    preferred_element_type=jnp.float32)
        _write_conv_out(a, ysc_ref, ssc_ref)


def _residual_finalize_kernel(*refs, has_proj):
    """out = BN2(y2) + (BNsc(ysc) | identity), then ReLU."""
    if has_proj:
        (y2_ref, sc2_ref, sh2_ref, ysc_ref, scs_ref, shs_ref, o_ref) = refs
    else:
        (y2_ref, sc2_ref, sh2_ref, idn_ref, o_ref) = refs
    p = y2_ref.shape[-1]
    t = (y2_ref[0].astype(jnp.float32) * sc2_ref[...].reshape(1, 1, p)
         + sh2_ref[...].reshape(1, 1, p))
    if has_proj:
        t = t + (ysc_ref[0].astype(jnp.float32) * scs_ref[...].reshape(1, 1, p)
                 + shs_ref[...].reshape(1, 1, p))
    else:
        t = t + idn_ref[0].astype(jnp.float32)
    o_ref[0] = jnp.maximum(t, 0.0).astype(o_ref.dtype)


# --------------------------- pallas_call wrappers -----------------------------
def _conv3x3_stats(xph, w, *, nph, ho, wo, taps, compute_dtype, vmem_limit):
    n = xph.shape[0] // nph
    hph, wph, cin = xph.shape[1:]
    planes = w.shape[-1]
    out_shape = (jax.ShapeDtypeStruct((n, ho, wo, planes), compute_dtype),
                 jax.ShapeDtypeStruct((n, 2, planes), jnp.float32))
    kern = functools.partial(_conv3x3_stats_kernel, taps=taps, ho=ho, wo=wo)
    return pl.pallas_call(
        kern,
        grid=(n,),
        in_specs=[pl.BlockSpec((nph, hph, wph, cin), lambda i: (i, 0, 0, 0)),
                  pl.BlockSpec((9, cin, planes), lambda i: (0, 0, 0))],
        out_shape=out_shape,
        out_specs=(pl.BlockSpec((1, ho, wo, planes), lambda i: (i, 0, 0, 0)),
                   pl.BlockSpec((1, 2, planes), lambda i: (i, 0, 0))),
        compiler_params=pltpu.CompilerParams(
            dimension_semantics=("parallel",), vmem_limit_bytes=vmem_limit),
        cost_estimate=pl.CostEstimate(
            flops=2 * n * ho * wo * 9 * cin * planes, transcendentals=0,
            bytes_accessed=_nbytes(xph, w, *out_shape)),
    )(xph, w)


def _bn_relu_conv3x3(y1, sc1, sh1, w2, *, xs=None, wsc=None, ho, wo,
                     compute_dtype, vmem_limit):
    n = y1.shape[0]
    planes = w2.shape[-1]
    has_proj = xs is not None

    inputs = [y1, sc1, sh1, w2]
    in_specs = [pl.BlockSpec((1, ho, wo, planes), lambda i: (i, 0, 0, 0)),
                pl.BlockSpec((1, planes), lambda i: (0, 0)),
                pl.BlockSpec((1, planes), lambda i: (0, 0)),
                pl.BlockSpec((9, planes, planes), lambda i: (0, 0, 0))]
    out_shape = [jax.ShapeDtypeStruct((n, ho, wo, planes), compute_dtype),
                 jax.ShapeDtypeStruct((n, 2, planes), jnp.float32)]
    out_specs = [pl.BlockSpec((1, ho, wo, planes), lambda i: (i, 0, 0, 0)),
                 pl.BlockSpec((1, 2, planes), lambda i: (i, 0, 0))]
    flops = 2 * n * ho * wo * 9 * planes * planes
    if has_proj:
        cin = xs.shape[-1]
        inputs += [xs, wsc]
        in_specs += [pl.BlockSpec((1, ho, wo, cin), lambda i: (i, 0, 0, 0)),
                     pl.BlockSpec((cin, planes), lambda i: (0, 0))]
        out_shape += [jax.ShapeDtypeStruct((n, ho, wo, planes), compute_dtype),
                      jax.ShapeDtypeStruct((n, 2, planes), jnp.float32)]
        out_specs += [pl.BlockSpec((1, ho, wo, planes), lambda i: (i, 0, 0, 0)),
                      pl.BlockSpec((1, 2, planes), lambda i: (i, 0, 0))]
        flops += 2 * n * ho * wo * cin * planes

    kern = functools.partial(_bn_relu_conv3x3_kernel, ho=ho, wo=wo,
                             has_proj=has_proj)
    return pl.pallas_call(
        kern,
        grid=(n,),
        in_specs=in_specs,
        out_shape=tuple(out_shape),
        out_specs=tuple(out_specs),
        scratch_shapes=[pltpu.VMEM((ho + 2, wo + 16, planes), jnp.float32)],
        compiler_params=pltpu.CompilerParams(
            dimension_semantics=("parallel",), vmem_limit_bytes=vmem_limit),
        cost_estimate=pl.CostEstimate(
            flops=flops, transcendentals=0,
            bytes_accessed=_nbytes(*inputs, *out_shape)),
    )(*inputs)


def _residual_finalize(y2, sc2, sh2, *, proj=None, identity=None,
                       out_dtype, vmem_limit):
    n, ho, wo, planes = y2.shape
    has_proj = proj is not None
    inputs = [y2, sc2, sh2]
    in_specs = [pl.BlockSpec((1, ho, wo, planes), lambda i: (i, 0, 0, 0)),
                pl.BlockSpec((1, planes), lambda i: (0, 0)),
                pl.BlockSpec((1, planes), lambda i: (0, 0))]
    if has_proj:
        ysc, scs, shs = proj
        inputs += [ysc, scs, shs]
        in_specs += [pl.BlockSpec((1, ho, wo, planes), lambda i: (i, 0, 0, 0)),
                     pl.BlockSpec((1, planes), lambda i: (0, 0)),
                     pl.BlockSpec((1, planes), lambda i: (0, 0))]
    else:
        inputs.append(identity)
        in_specs.append(pl.BlockSpec((1, ho, wo, planes),
                                     lambda i: (i, 0, 0, 0)))

    kern = functools.partial(_residual_finalize_kernel, has_proj=has_proj)
    out_shape = jax.ShapeDtypeStruct((n, ho, wo, planes), out_dtype)
    return pl.pallas_call(
        kern,
        grid=(n,),
        in_specs=in_specs,
        out_shape=out_shape,
        out_specs=pl.BlockSpec((1, ho, wo, planes), lambda i: (i, 0, 0, 0)),
        compiler_params=pltpu.CompilerParams(
            dimension_semantics=("parallel",), vmem_limit_bytes=vmem_limit),
        cost_estimate=pl.CostEstimate(
            flops=6 * n * ho * wo * planes, transcendentals=0,
            bytes_accessed=_nbytes(*inputs, out_shape)),
    )(*inputs)


# ------------------------------- JAX glue -------------------------------------
def _phase_split(x_nhwc, stride):
    """Zero-pad spatially by 1 and split the padded image into stride*stride
    phase sub-images so every tap of a 3x3/stride-s conv is a contiguous
    (ho, wo) window inside the kernel (no (M, 9*C) patch matrix in HBM)."""
    n, h, w, c = x_nhwc.shape
    xp = jnp.pad(x_nhwc, ((0, 0), (1, 1), (1, 1), (0, 0)))
    if stride == 1:
        return xp, 1, h + 2, w + 2
    s = stride
    hph = -(-(h + 2) // s)
    wph = -(-(w + 2) // s)
    phases = []
    for ph_h in range(s):
        for ph_w in range(s):
            sub = xp[:, ph_h::s, ph_w::s, :]
            sub = jnp.pad(sub, ((0, 0), (0, hph - sub.shape[1]),
                                (0, wph - sub.shape[2]), (0, 0)))
            phases.append(sub)
    xph = jnp.stack(phases, axis=1).reshape(n * s * s, hph, wph, c)
    return xph, s * s, hph, wph


def _fold_bn(stats, gamma, beta, count):
    """Fold training-mode BatchNorm into one per-channel scale/shift from the
    per-image [sum, sum_sq] stats (tiny (N,2,C) reduction, hoisted out of the
    per-tile kernels).  Variance is clamped at 0 before rsqrt."""
    s = jnp.sum(stats, axis=0)
    mean = s[0] / count
    var = jnp.maximum(s[1] / count - mean * mean, 0.0)
    scale = gamma.astype(jnp.float32) * jax.lax.rsqrt(var + EPS)
    shift = beta.astype(jnp.float32) - mean * scale
    return scale.reshape(1, -1), shift.reshape(1, -1)


def basic_block_forward(x_nchw, p, stride, *, compute_dtype=jnp.bfloat16):
    """Pallas implementation of BasicBlock.forward (training-mode BN)."""
    n, cin, h, w = x_nchw.shape
    planes = p["w1"].shape[0]
    ho = (h - 1) // stride + 1
    wo = (w - 1) // stride + 1
    count = n * ho * wo
    vmem_limit = _vmem_limit_bytes()

    # TODO(synk): in a full ResNet keep activations NHWC/bf16 between blocks so
    # this transpose pair (and the final one) disappears.
    x_nhwc = jnp.transpose(x_nchw, (0, 2, 3, 1))
    x_cd = x_nhwc.astype(compute_dtype)

    # ---- conv1 -> (y1, BN1 stats) -------------------------------------------
    # The halo pad / stride-phase split stays f32 so in-kernel tap slicing only
    # shifts 32-bit sublanes.
    # TODO(synk): do the halo via in-kernel masking or manual DMA and keep this
    # stream bf16 once packed sublane shifts are validated on all generations.
    xph, nph, hph, wph = _phase_split(x_nhwc.astype(jnp.float32), stride)
    taps = _taps(stride)
    for _, dh, dw in taps:
        assert dh + ho <= hph and dw + wo <= wph
    w1 = jnp.transpose(p["w1"], (2, 3, 1, 0)).reshape(9, cin, planes)
    y1, s1 = _conv3x3_stats(xph, w1.astype(compute_dtype), nph=nph, ho=ho,
                            wo=wo, taps=taps, compute_dtype=compute_dtype,
                            vmem_limit=vmem_limit)
    sc1, sh1 = _fold_bn(s1, p["g1"], p["b1"], count)

    # ---- BN1+ReLU fused into conv2 (+ fused projection shortcut) ------------
    # TODO(synk): for real ResNet widths (planes >= 256) add K/N tiling with
    # 256-wide MXU tiles (v6e/v7x) and row tiling when images outgrow VMEM.
    w2 = jnp.transpose(p["w2"], (2, 3, 1, 0)).reshape(9, planes, planes)
    w2 = w2.astype(compute_dtype)
    if "wsc" in p:
        xs = x_cd[:, ::stride, ::stride, :]
        wsc = jnp.transpose(p["wsc"].reshape(planes, cin)).astype(compute_dtype)
        y2, s2, ysc, ssc = _bn_relu_conv3x3(
            y1, sc1, sh1, w2, xs=xs, wsc=wsc, ho=ho, wo=wo,
            compute_dtype=compute_dtype, vmem_limit=vmem_limit)
        sc2, sh2 = _fold_bn(s2, p["g2"], p["b2"], count)
        scs, shs = _fold_bn(ssc, p["gsc"], p["bsc"], count)
        out = _residual_finalize(y2, sc2, sh2, proj=(ysc, scs, shs),
                                 out_dtype=compute_dtype,
                                 vmem_limit=vmem_limit)
    else:
        y2, s2 = _bn_relu_conv3x3(
            y1, sc1, sh1, w2, ho=ho, wo=wo,
            compute_dtype=compute_dtype, vmem_limit=vmem_limit)
        sc2, sh2 = _fold_bn(s2, p["g2"], p["b2"], count)
        out = _residual_finalize(y2, sc2, sh2, identity=x_cd,
                                 out_dtype=compute_dtype,
                                 vmem_limit=vmem_limit)

    return jnp.transpose(out, (0, 3, 1, 2))            # back to NCHW


# ---------------------------- pure-JAX reference -------------------------------
def basic_block_ref(x, p, stride):
    def conv(x, w, s, pad):
        return jax.lax.conv_general_dilated(
            x, w, (s, s), ((pad, pad), (pad, pad)),
            dimension_numbers=("NCHW", "OIHW", "NCHW"))

    def bn(x, g, b):
        mu = jnp.mean(x, axis=(0, 2, 3), keepdims=True)
        var = jnp.mean(jnp.square(x - mu), axis=(0, 2, 3), keepdims=True)
        return (x - mu) * jax.lax.rsqrt(var + EPS) * g[None, :, None, None] \
            + b[None, :, None, None]

    out = jax.nn.relu(bn(conv(x, p["w1"], stride, 1), p["g1"], p["b1"]))
    out = bn(conv(out, p["w2"], 1, 1), p["g2"], p["b2"])
    sc = bn(conv(x, p["wsc"], stride, 0), p["gsc"], p["bsc"]) if "wsc" in p else x
    return jax.nn.relu(out + sc)


# ------------------------------- param init ------------------------------------
def init_params(key, in_planes, planes, stride):
    ks = jax.random.split(key, 9)
    p = {
        "w1": 0.2 * jax.random.normal(ks[0], (planes, in_planes, 3, 3), jnp.float32),
        "g1": 1.0 + 0.1 * jax.random.normal(ks[1], (planes,), jnp.float32),
        "b1": 0.1 * jax.random.normal(ks[2], (planes,), jnp.float32),
        "w2": 0.2 * jax.random.normal(ks[3], (planes, planes, 3, 3), jnp.float32),
        "g2": 1.0 + 0.1 * jax.random.normal(ks[4], (planes,), jnp.float32),
        "b2": 0.1 * jax.random.normal(ks[5], (planes,), jnp.float32),
    }
    if stride != 1 or in_planes != planes:  # expansion == 1
        p["wsc"] = 0.2 * jax.random.normal(ks[6], (planes, in_planes, 1, 1), jnp.float32)
        p["gsc"] = 1.0 + 0.1 * jax.random.normal(ks[7], (planes,), jnp.float32)
        p["bsc"] = 0.1 * jax.random.normal(ks[8], (planes,), jnp.float32)
    return p


# ---------------------------------- main ----------------------------------------
if __name__ == "__main__":
    root = jax.random.PRNGKey(0)

    # (in_planes, planes, stride): projection shortcut, identity shortcut,
    # and strided projection shortcut.
    configs = [(4, 8, 1), (8, 8, 1), (4, 8, 2)]
    for i, (cin, planes, stride) in enumerate(configs):
        kx, kp = jax.random.split(jax.random.fold_in(root, i))
        x = jax.random.normal(kx, (2, cin, 16, 16), jnp.float32)
        params = init_params(kp, cin, planes, stride)
        ref = basic_block_ref(x, params, stride)

        # exactness check: f32 operands / f32 intermediates / f32 output
        out32 = jax.block_until_ready(
            basic_block_forward(x, params, stride, compute_dtype=jnp.float32))
        assert out32.shape == ref.shape, (out32.shape, ref.shape)
        err32 = float(jnp.max(jnp.abs(out32 - ref)))
        assert err32 < 2e-3, f"f32 config {(cin, planes, stride)} max abs err {err32}"

        # fast path: bf16 MXU operands / bf16 intermediates, f32 accumulation
        out16 = jax.block_until_ready(
            basic_block_forward(x, params, stride, compute_dtype=jnp.bfloat16))
        err16 = float(jnp.max(jnp.abs(out16.astype(jnp.float32) - ref)))
        assert err16 < 1.5e-1, f"bf16 config {(cin, planes, stride)} max abs err {err16}"

    print("KERNEL_OK")
</pallas_src>

<mosaic_0001>
module attributes {stable_mosaic.version = 11 : i64} {
  func.func @_conv3x3_stats_kernel(%arg0: i32, %arg1: memref<1x18x18x4xf32, #tpu.memory_space<vmem>>, %arg2: memref<9x4x8xf32, #tpu.memory_space<vmem>>, %arg3: memref<1x16x16x8xf32, #tpu.memory_space<vmem>>, %arg4: memref<1x2x8xf32, #tpu.memory_space<vmem>>) attributes {dimension_semantics = [#tpu.dimension_semantics<parallel>], iteration_bounds = array<i64: 2>, scalar_prefetch = 0 : i64, scratch_operands = 0 : i64, tpu.core_type = #tpu.core_type<tc>, window_params = [{transform_indices = @transform_0, window_bounds = array<i64: 1, 18, 18, 4>}, {pipeline_mode = #tpu.pipeline_mode<synchronous>, transform_indices = @transform_1, window_bounds = array<i64: 9, 4, 8>}, {transform_indices = @transform_2, window_bounds = array<i64: 1, 16, 16, 8>}, {transform_indices = @transform_3, window_bounds = array<i64: 1, 2, 8>}]} {
    %cst = arith.constant 0.000000e+00 : f32
    %0 = vector.broadcast %cst : f32 to vector<256x8xf32>
    %c0 = arith.constant 0 : index
    %c0_0 = arith.constant 0 : index
    %c0_1 = arith.constant 0 : index
    %c0_2 = arith.constant 0 : index
    %1 = vector.load %arg1[%c0, %c0_0, %c0_1, %c0_2] : memref<1x18x18x4xf32, #tpu.memory_space<vmem>>, vector<1x16x16x4xf32>
    %2 = vector.shape_cast %1 : vector<1x16x16x4xf32> to vector<16x16x4xf32>
    %3 = vector.shape_cast %2 : vector<16x16x4xf32> to vector<256x4xf32>
    %c0_3 = arith.constant 0 : index
    %c0_4 = arith.constant 0 : index
    %c0_5 = arith.constant 0 : index
    %4 = vector.load %arg2[%c0_3, %c0_4, %c0_5] : memref<9x4x8xf32, #tpu.memory_space<vmem>>, vector<1x4x8xf32>
    %5 = vector.shape_cast %4 : vector<1x4x8xf32> to vector<4x8xf32>
    %cst_6 = arith.constant dense<0.000000e+00> : vector<256x8xf32>
    %6 = tpu.matmul %3, %5, %cst_6 {dimension_numbers = #tpu.dot_dimension_numbers<[1], [0], [0], [1], [0, 0, 1, 1], [], []>} : vector<256x4xf32>, vector<4x8xf32>, vector<256x8xf32> -> vector<256x8xf32>
    %7 = arith.addf %0, %6 : vector<256x8xf32>
    %c0_7 = arith.constant 0 : index
    %c0_8 = arith.constant 0 : index
    %c1 = arith.constant 1 : index
    %c0_9 = arith.constant 0 : index
    %8 = vector.load %arg1[%c0_7, %c0_8, %c1, %c0_9] : memref<1x18x18x4xf32, #tpu.memory_space<vmem>>, vector<1x16x16x4xf32>
    %9 = vector.shape_cast %8 : vector<1x16x16x4xf32> to vector<16x16x4xf32>
    %10 = vector.shape_cast %9 : vector<16x16x4xf32> to vector<256x4xf32>
    %c1_10 = arith.constant 1 : index
    %c0_11 = arith.constant 0 : index
    %c0_12 = arith.constant 0 : index
    %11 = vector.load %arg2[%c1_10, %c0_11, %c0_12] : memref<9x4x8xf32, #tpu.memory_space<vmem>>, vector<1x4x8xf32>
    %12 = vector.shape_cast %11 : vector<1x4x8xf32> to vector<4x8xf32>
    %cst_13 = arith.constant dense<0.000000e+00> : vector<256x8xf32>
    %13 = tpu.matmul %10, %12, %cst_13 {dimension_numbers = #tpu.dot_dimension_numbers<[1], [0], [0], [1], [0, 0, 1, 1], [], []>} : vector<256x4xf32>, vector<4x8xf32>, vector<256x8xf32> -> vector<256x8xf32>
    %14 = arith.addf %7, %13 : vector<256x8xf32>
    %c0_14 = arith.constant 0 : index
    %c0_15 = arith.constant 0 : index
    %c2 = arith.constant 2 : index
    %c0_16 = arith.constant 0 : index
    %15 = vector.load %arg1[%c0_14, %c0_15, %c2, %c0_16] : memref<1x18x18x4xf32, #tpu.memory_space<vmem>>, vector<1x16x16x4xf32>
    %16 = vector.shape_cast %15 : vector<1x16x16x4xf32> to vector<16x16x4xf32>
    %17 = vector.shape_cast %16 : vector<16x16x4xf32> to vector<256x4xf32>
    %c2_17 = arith.constant 2 : index
    %c0_18 = arith.constant 0 : index
    %c0_19 = arith.constant 0 : index
    %18 = vector.load %arg2[%c2_17, %c0_18, %c0_19] : memref<9x4x8xf32, #tpu.memory_space<vmem>>, vector<1x4x8xf32>
    %19 = vector.shape_cast %18 : vector<1x4x8xf32> to vector<4x8xf32>
    %cst_20 = arith.constant dense<0.000000e+00> : vector<256x8xf32>
    %20 = tpu.matmul %17, %19, %cst_20 {dimension_numbers = #tpu.dot_dimension_numbers<[1], [0], [0], [1], [0, 0, 1, 1], [], []>} : vector<256x4xf32>, vector<4x8xf32>, vector<256x8xf32> -> vector<256x8xf32>
    %21 = arith.addf %14, %20 : vector<256x8xf32>
    %c0_21 = arith.constant 0 : index
    %c1_22 = arith.constant 1 : index
    %c0_23 = arith.constant 0 : index
    %c0_24 = arith.constant 0 : index
    %22 = vector.load %arg1[%c0_21, %c1_22, %c0_23, %c0_24] : memref<1x18x18x4xf32, #tpu.memory_space<vmem>>, vector<1x16x16x4xf32>
    %23 = vector.shape_cast %22 : vector<1x16x16x4xf32> to vector<16x16x4xf32>
    %24 = vector.shape_cast %23 : vector<16x16x4xf32> to vector<256x4xf32>
    %c3 = arith.constant 3 : index
    %c0_25 = arith.constant 0 : index
    %c0_26 = arith.constant 0 : index
    %25 = vector.load %arg2[%c3, %c0_25, %c0_26] : memref<9x4x8xf32, #tpu.memory_space<vmem>>, vector<1x4x8xf32>
    %26 = vector.shape_cast %25 : vector<1x4x8xf32> to vector<4x8xf32>
    %cst_27 = arith.constant dense<0.000000e+00> : vector<256x8xf32>
    %27 = tpu.matmul %24, %26, %cst_27 {dimension_numbers = #tpu.dot_dimension_numbers<[1], [0], [0], [1], [0, 0, 1, 1], [], []>} : vector<256x4xf32>, vector<4x8xf32>, vector<256x8xf32> -> vector<256x8xf32>
    %28 = arith.addf %21, %27 : vector<256x8xf32>
    %c0_28 = arith.constant 0 : index
    %c1_29 = arith.constant 1 : index
    %c1_30 = arith.constant 1 : index
    %c0_31 = arith.constant 0 : index
    %29 = vector.load %arg1[%c0_28, %c1_29, %c1_30, %c0_31] : memref<1x18x18x4xf32, #tpu.memory_space<vmem>>, vector<1x16x16x4xf32>
    %30 = vector.shape_cast %29 : vector<1x16x16x4xf32> to vector<16x16x4xf32>
    %31 = vector.shape_cast %30 : vector<16x16x4xf32> to vector<256x4xf32>
    %c4 = arith.constant 4 : index
    %c0_32 = arith.constant 0 : index
    %c0_33 = arith.constant 0 : index
    %32 = vector.load %arg2[%c4, %c0_32, %c0_33] : memref<9x4x8xf32, #tpu.memory_space<vmem>>, vector<1x4x8xf32>
    %33 = vector.shape_cast %32 : vector<1x4x8xf32> to vector<4x8xf32>
    %cst_34 = arith.constant dense<0.000000e+00> : vector<256x8xf32>
    %34 = tpu.matmul %31, %33, %cst_34 {dimension_numbers = #tpu.dot_dimension_numbers<[1], [0], [0], [1], [0, 0, 1, 1], [], []>} : vector<256x4xf32>, vector<4x8xf32>, vector<256x8xf32> -> vector<256x8xf32>
    %35 = arith.addf %28, %34 : vector<256x8xf32>
    %c0_35 = arith.constant 0 : index
    %c1_36 = arith.constant 1 : index
    %c2_37 = arith.constant 2 : index
    %c0_38 = arith.constant 0 : index
    %36 = vector.load %arg1[%c0_35, %c1_36, %c2_37, %c0_38] : memref<1x18x18x4xf32, #tpu.memory_space<vmem>>, vector<1x16x16x4xf32>
    %37 = vector.shape_cast %36 : vector<1x16x16x4xf32> to vector<16x16x4xf32>
    %38 = vector.shape_cast %37 : vector<16x16x4xf32> to vector<256x4xf32>
    %c5 = arith.constant 5 : index
    %c0_39 = arith.constant 0 : index
    %c0_40 = arith.constant 0 : index
    %39 = vector.load %arg2[%c5, %c0_39, %c0_40] : memref<9x4x8xf32, #tpu.memory_space<vmem>>, vector<1x4x8xf32>
    %40 = vector.shape_cast %39 : vector<1x4x8xf32> to vector<4x8xf32>
    %cst_41 = arith.constant dense<0.000000e+00> : vector<256x8xf32>
    %41 = tpu.matmul %38, %40, %cst_41 {dimension_numbers = #tpu.dot_dimension_numbers<[1], [0], [0], [1], [0, 0, 1, 1], [], []>} : vector<256x4xf32>, vector<4x8xf32>, vector<256x8xf32> -> vector<256x8xf32>
    %42 = arith.addf %35, %41 : vector<256x8xf32>
    %c0_42 = arith.constant 0 : index
    %c2_43 = arith.constant 2 : index
    %c0_44 = arith.constant 0 : index
    %c0_45 = arith.constant 0 : index
    %43 = vector.load %arg1[%c0_42, %c2_43, %c0_44, %c0_45] : memref<1x18x18x4xf32, #tpu.memory_space<vmem>>, vector<1x16x16x4xf32>
    %44 = vector.shape_cast %43 : vector<1x16x16x4xf32> to vector<16x16x4xf32>
    %45 = vector.shape_cast %44 : vector<16x16x4xf32> to vector<256x4xf32>
    %c6 = arith.constant 6 : index
    %c0_46 = arith.constant 0 : index
    %c0_47 = arith.constant 0 : index
    %46 = vector.load %arg2[%c6, %c0_46, %c0_47] : memref<9x4x8xf32, #tpu.memory_space<vmem>>, vector<1x4x8xf32>
    %47 = vector.shape_cast %46 : vector<1x4x8xf32> to vector<4x8xf32>
    %cst_48 = arith.constant dense<0.000000e+00> : vector<256x8xf32>
    %48 = tpu.matmul %45, %47, %cst_48 {dimension_numbers = #tpu.dot_dimension_numbers<[1], [0], [0], [1], [0, 0, 1, 1], [], []>} : vector<256x4xf32>, vector<4x8xf32>, vector<256x8xf32> -> vector<256x8xf32>
    %49 = arith.addf %42, %48 : vector<256x8xf32>
    %c0_49 = arith.constant 0 : index
    %c2_50 = arith.constant 2 : index
    %c1_51 = arith.constant 1 : index
    %c0_52 = arith.constant 0 : index
    %50 = vector.load %arg1[%c0_49, %c2_50, %c1_51, %c0_52] : memref<1x18x18x4xf32, #tpu.memory_space<vmem>>, vector<1x16x16x4xf32>
    %51 = vector.shape_cast %50 : vector<1x16x16x4xf32> to vector<16x16x4xf32>
    %52 = vector.shape_cast %51 : vector<16x16x4xf32> to vector<256x4xf32>
    %c7 = arith.constant 7 : index
    %c0_53 = arith.constant 0 : index
    %c0_54 = arith.constant 0 : index
    %53 = vector.load %arg2[%c7, %c0_53, %c0_54] : memref<9x4x8xf32, #tpu.memory_space<vmem>>, vector<1x4x8xf32>
    %54 = vector.shape_cast %53 : vector<1x4x8xf32> to vector<4x8xf32>
    %cst_55 = arith.constant dense<0.000000e+00> : vector<256x8xf32>
    %55 = tpu.matmul %52, %54, %cst_55 {dimension_numbers = #tpu.dot_dimension_numbers<[1], [0], [0], [1], [0, 0, 1, 1], [], []>} : vector<256x4xf32>, vector<4x8xf32>, vector<256x8xf32> -> vector<256x8xf32>
    %56 = arith.addf %49, %55 : vector<256x8xf32>
    %c0_56 = arith.constant 0 : index
    %c2_57 = arith.constant 2 : index
    %c2_58 = arith.constant 2 : index
    %c0_59 = arith.constant 0 : index
    %57 = vector.load %arg1[%c0_56, %c2_57, %c2_58, %c0_59] : memref<1x18x18x4xf32, #tpu.memory_space<vmem>>, vector<1x16x16x4xf32>
    %58 = vector.shape_cast %57 : vector<1x16x16x4xf32> to vector<16x16x4xf32>
    %59 = vector.shape_cast %58 : vector<16x16x4xf32> to vector<256x4xf32>
    %c8 = arith.constant 8 : index
    %c0_60 = arith.constant 0 : index
    %c0_61 = arith.constant 0 : index
    %60 = vector.load %arg2[%c8, %c0_60, %c0_61] : memref<9x4x8xf32, #tpu.memory_space<vmem>>, vector<1x4x8xf32>
    %61 = vector.shape_cast %60 : vector<1x4x8xf32> to vector<4x8xf32>
    %cst_62 = arith.constant dense<0.000000e+00> : vector<256x8xf32>
    %62 = tpu.matmul %59, %61, %cst_62 {dimension_numbers = #tpu.dot_dimension_numbers<[1], [0], [0], [1], [0, 0, 1, 1], [], []>} : vector<256x4xf32>, vector<4x8xf32>, vector<256x8xf32> -> vector<256x8xf32>
    %63 = arith.addf %56, %62 : vector<256x8xf32>
    %64 = vector.shape_cast %63 : vector<256x8xf32> to vector<16x16x8xf32>
    %c0_63 = arith.constant 0 : index
    %c0_64 = arith.constant 0 : index
    %c0_65 = arith.constant 0 : index
    %c0_66 = arith.constant 0 : index
    %65 = vector.load %arg3[%c0_63, %c0_64, %c0_65, %c0_66] : memref<1x16x16x8xf32, #tpu.memory_space<vmem>>, vector<1x16x16x8xf32>
    %66 = vector.shape_cast %65 : vector<1x16x16x8xf32> to vector<16x16x8xf32>
    %67 = vector.shape_cast %64 : vector<16x16x8xf32> to vector<1x16x16x8xf32>
    tpu.vector_store %arg3[%c0_63, %c0_64, %c0_65, %c0_66], %67 {strides = array<i32>} : memref<1x16x16x8xf32, #tpu.memory_space<vmem>>, vector<1x16x16x8xf32>,
    %cst_67 = arith.constant dense<0.000000e+00> : vector<8xf32>
    %68 = vector.multi_reduction <add>, %63, %cst_67 [0] : vector<256x8xf32> to vector<8xf32>
    %69 = vector.shape_cast %68 : vector<8xf32> to vector<1x8xf32>
    %c0_68 = arith.constant 0 : index
    %c0_69 = arith.constant 0 : index
    %c0_70 = arith.constant 0 : index
    %70 = vector.load %arg4[%c0_68, %c0_69, %c0_70] : memref<1x2x8xf32, #tpu.memory_space<vmem>>, vector<1x1x8xf32>
    %71 = vector.shape_cast %70 : vector<1x1x8xf32> to vector<1x8xf32>
    %72 = vector.shape_cast %69 : vector<1x8xf32> to vector<1x1x8xf32>
    tpu.vector_store %arg4[%c0_68, %c0_69, %c0_70], %72 {strides = array<i32>} : memref<1x2x8xf32, #tpu.memory_space<vmem>>, vector<1x1x8xf32>,
    %73 = arith.mulf %63, %63 : vector<256x8xf32>
    %cst_71 = arith.constant dense<0.000000e+00> : vector<8xf32>
    %74 = vector.multi_reduction <add>, %73, %cst_71 [0] : vector<256x8xf32> to vector<8xf32>
    %75 = vector.shape_cast %74 : vector<8xf32> to vector<1x8xf32>
    %c0_72 = arith.constant 0 : index
    %c1_73 = arith.constant 1 : index
    %c0_74 = arith.constant 0 : index
    %76 = vector.load %arg4[%c0_72, %c1_73, %c0_74] : memref<1x2x8xf32, #tpu.memory_space<vmem>>, vector<1x1x8xf32>
    %77 = vector.shape_cast %76 : vector<1x1x8xf32> to vector<1x8xf32>
    %78 = vector.shape_cast %75 : vector<1x8xf32> to vector<1x1x8xf32>
    tpu.vector_store %arg4[%c0_72, %c1_73, %c0_74], %78 {strides = array<i32>} : memref<1x2x8xf32, #tpu.memory_space<vmem>>, vector<1x1x8xf32>,
    return
  }
  func.func @transform_0(%arg0: i32) -> (i32, i32, i32, i32) {
    %c0_i32 = arith.constant 0 : i32
    %c0_i32_0 = arith.constant 0 : i32
    %c0_i32_1 = arith.constant 0 : i32
    %c0_i32_2 = arith.constant 0 : i32
    return %arg0, %c0_i32, %c0_i32_0, %c0_i32_1 : i32, i32, i32, i32
  }
  func.func @transform_1(%arg0: i32) -> (i32, i32, i32) {
    %c0_i32 = arith.constant 0 : i32
    %c0_i32_0 = arith.constant 0 : i32
    %c0_i32_1 = arith.constant 0 : i32
    %c0_i32_2 = arith.constant 0 : i32
    return %c0_i32, %c0_i32_0, %c0_i32_1 : i32, i32, i32
  }
  func.func @transform_2(%arg0: i32) -> (i32, i32, i32, i32) {
    %c0_i32 = arith.constant 0 : i32
    %c0_i32_0 = arith.constant 0 : i32
    %c0_i32_1 = arith.constant 0 : i32
    %c0_i32_2 = arith.constant 0 : i32
    return %arg0, %c0_i32, %c0_i32_0, %c0_i32_1 : i32, i32, i32, i32
  }
  func.func @transform_3(%arg0: i32) -> (i32, i32, i32) {
    %c0_i32 = arith.constant 0 : i32
    %c0_i32_0 = arith.constant 0 : i32
    %c0_i32_1 = arith.constant 0 : i32
    return %arg0, %c0_i32, %c0_i32_0 : i32, i32, i32
  }
}

</mosaic_0001>

<bundles_post_ra>
// kernel: tpu_custom_call.1
= control target key start
LH: loop header
LB: loop body
LE: loop exit
PB: predicated region body
PF: predicated region fallthrough
CT: control target
= control target key end

     0   :  { %9 = vsyncpa [#allocation3], 0  ;;  %s4813_s0 = inlined_call_operand.vmem [shape: f32[2,18,18,4], index: 0, kind: input, shape index: {}]   ;;  %s4814_s1 = inlined_call_operand.vmem [shape: f32[9,4,8], index: 1, kind: input, shape index: {}]   ;;  %s4815_s2 = inlined_call_operand.vmem [shape: f32[2,16,16,8], index: 2, kind: output, shape index: {0}]   ;;  %s4816_s3 = inlined_call_operand.hbm [shape: f32[2,2,8], index: 3, kind: output, shape index: {1}]  }
   0x1   :  { %11 = vsyncpa [#allocation3 + $0x1], 0  ;;  %s3574_s12 = smov 0   ;;  %s3576_s13 = smov 0  }
   0x2   :  { %s3578_s14 = smov 0   ;;  %s3580_s15 = smov 0  }
   0x3 LB: > { %s3595_s16 = sadd.s32 4294967295, %s3552_s15   ;;  %s2937_s17 = sadd.s32 4294967294, %s3552_s15   ;;  %s3552_s15 = sphi %s3580_s15, %s4920_s15   ;;  %s3548_s14 = sphi %s3578_s14, %s4919_s14   ;;  %s3544_s13 = sphi %s3576_s13, %s4918_s13   ;;  %s3540_s12 = sphi %s3574_s12, %s4917_s12  }
   0x4   : > { %s3599_s18 = sadd.s32 1, %s3552_s15   ;;  %s97_s19 = sadd.s32 1, %s3548_s14 }
   0x5   : > { %s94_s20 = ssub.s32 %s3552_s15, %s3599_s18  ;;  %p107_p0 = scmp.ne.s32.totalorder %s3548_s14, %s3544_s13 }
   0x6   : > { %p95_p1 = scmp.eq.s32.totalorder %s94_s20, 0  ;;  %p108_p2 = scmp.eq.s32.totalorder %s3595_s16, 1 }
   0x7   : > { %p113_p3 = scmp.ne.s32.totalorder %s3544_s13, %s3540_s12  ;;  %p114_p4 = scmp.eq.s32.totalorder %s2937_s17, 1 }
   0x8   : > { %s3610_s21 = scalar_select %p95_p1, %s3548_s14, %s97_s19  }
   0x9   : > { %p3612_p5 = por %p108_p2, %p107_p0  ;;  %p3616_p6 = por %p114_p4, %p113_p3 }
   0xa   : > { %p2940_p7 = scmp.ge.s32.totalorder %s3552_s15, 1  ;;  %p143_p8 = scmp.lt.s32.totalorder %s3552_s15, 3 }
   0xc   : > { %p144_p9 = pnand %p2940_p7, %p143_p8 }
   0xe   : > { %147 = sbr.rel (%p144_p9) target bundleno = 754 (0x2f2), region = 28 }
  0x13   : > { %v2945_v0 = vld [vmem:[%s4814_s1 + $0x4] sm:$0xf]  ;;  %vm346_vm0 = vcmask 1043456   ;;  %p172_p10 = scmp.lt.s32.totalorder %s3595_s16, 1  ;;  %v3012_v1 = vld [vmem:[%s4814_s1 + $0x8] sm:$0xf] }
  0x14   : > { %3447 = vmatpush.msk.msra.mxu1 %vm346_vm0, %v2945_v0  ;;  %3448 = vmatpush.msk.msra.mxu2 %vm346_vm0, %v2945_v0  ;;  %v3078_v2 = vld [vmem:[%s4814_s1 + $0xc] sm:$0xf]  ;;  %v214_v3 = vld [vmem:[%s4814_s1] sm:$0xf]  ;;  %v3144_v4 = vld [vmem:[%s4814_s1 + $0x10] sm:$0xf] }
  0x15   : > { %s3638_s5 = scalar_select %p172_p10, %s3595_s16, 1  ;;  %3449 = vmatpush.msk.msra.mxu3 %vm346_vm0, %v2945_v0  ;;  %2946 = vmatpush.msk.msra.mxu0 %vm346_vm0, %v2945_v0  ;;  %vm249_vm1 = vcmask 31744   ;;  %v3276_v25 = vld [vmem:[%s4814_s1 + $0x18] sm:$0xf]  ;;  %v3342_v26 = vld [vmem:[%s4814_s1 + $0x1c] sm:$0xf] }
  0x16   : > { %3013 = vmatpush.msk.msrb.mxu2 %vm346_vm0, %v3012_v1  ;;  %2979 = vmatpush.msk.msrb.mxu1 %vm346_vm0, %v214_v3  ;;  %v3210_v27 = vld [vmem:[%s4814_s1 + $0x14] sm:$0xf]  ;;  %v3408_v32 = vld [vmem:[%s4814_s1 + $0x20] sm:$0xf]  ;;  %vm2623_vm2 = vcmask 64512   ;;  %vm2725_vm3 = vcmask 57344  }
  0x17   : > { %3079 = vmatpush.msk.msrb.mxu3 %vm346_vm0, %v3078_v2  ;;  %s3450_s8 = smul.u32 432, %s3638_s5  ;;  %3145 = vmatpush.msk.msrb.mxu0 %vm346_vm0, %v3144_v4  ;;  %s3446_s29 = sshll.u32 %s3638_s5, 8 }
  0x18   : > { %s4508_s6 = scalar_lea.vmem %s4815_s2, %s3446_s29  ;;  %s169_s5 = sand.u32 1, %s3544_s13  }
  0x19   : > { %s3653_s11 = scalar_lea.vmem %s4813_s0, %s3450_s8  ;;  %s2941_s7 = sshll.u32 %s169_s5, 1 }
  0x1a   : > { %v3656_v5 = vld [vmem:[%s3653_s11 + $0x61] sm:$0xff]  ;;  %v3673_v9 = vld [vmem:[%s3653_s11 + $0x69] sm:$0xff]  ;;  %v3690_v13 = vld [vmem:[%s3653_s11 + $0x79] sm:$0xff]  ;;  %s3443_s8 = sshll.u32 %s3595_s16, 1  ;;  %s171_s17 = scalar_lea.vmem [#allocation2], %s2941_s7 }
  0x1b   : > { %v3659_v6 = vld [vmem:[%s3653_s11 + $0xc1] sm:$0xff]  ;;  %2955 = vmatmul.msk.f32.vlgmr.msra.gmra.mxu1 %vm249_vm1, %v3656_v5  ;;  %v3676_v10 = vld [vmem:[%s3653_s11 + $0xc9] sm:$0xff]  ;;  %v3693_v14 = vld [vmem:[%s3653_s11 + $0xd9] sm:$0xff]  ;;  %s2850_s19 = sshll.u32 %s171_s17, 4  ;;  %s2835_s16 = scalar_lea.sflag [#allocation3], %s169_s5  ;;  %s2851_s19 = int_to_ptr.vmem [resolvable:$true] %s2850_s19 }
  0x1c   : > { %v3662_v7 = vld [vmem:[%s3653_s11 + $0x121] sm:$0xff]  ;;  %2963 = vmatmul.msk.f32.vlgmr.msra.gmra.mxu2 %vm249_vm1, %v3659_v6  ;;  %v3679_v11 = vld [vmem:[%s3653_s11 + $0x129] sm:$0xff]  ;;  %v3696_v15 = vld [vmem:[%s3653_s11 + $0x139] sm:$0xff]  ;;  %3211 = vmatpush.msk.msra.mxu1 %vm346_vm0, %v3210_v27  ;;  %s3510_s28 = scalar_lea.hbm %s4816_s3, 4 }
  0x1d   : > { %v215_v8 = vld [vmem:[%s3653_s11 + $0x1] sm:$0xff]  ;;  %2971 = vmatmul.msk.f32.vlgmr.msra.gmra.mxu3 %vm249_vm1, %v3662_v7  ;;  %v216_v12 = vld [vmem:[%s3653_s11 + $0x9] sm:$0xff]  ;;  %v217_v16 = vld [vmem:[%s3653_s11 + $0x19] sm:$0xff]  ;;  %3277 = vmatpush.msk.msra.mxu2 %vm346_vm0, %v3276_v25 }
  0x1e   : > { %2947 = vmatmul.msk.f32.vlgmr.msra.gmra.mxu0 %vm249_vm1, %v215_v8  ;;  %v3707_v17 = vld [vmem:[%s3653_s11 + $0x81] sm:$0xff]  ;;  %v3724_v21 = vld [vmem:[%s3653_s11 + $0x91] sm:$0xff]  ;;  %3343 = vmatpush.msk.msra.mxu3 %vm346_vm0, %v3342_v26  ;;  %v3756_v28 = vld [vmem:[%s3653_s11 + $0x99] sm:$0xff] }
  0x1f   : > { %v3710_v18 = vld [vmem:[%s3653_s11 + $0xe1] sm:$0xff]  ;;  %v3727_v22 = vld [vmem:[%s3653_s11 + $0xf1] sm:$0xff]  ;;  %v3759_v29 = vld [vmem:[%s3653_s11 + $0xf9] sm:$0xff]  ;;  %3409 = vmatpush.msk.msra.mxu0 %vm346_vm0, %v3408_v32 }
  0x20   : > { %v3713_v19 = vld [vmem:[%s3653_s11 + $0x141] sm:$0xff]  ;;  %v3730_v23 = vld [vmem:[%s3653_s11 + $0x151] sm:$0xff]  ;;  %v3762_v30 = vld [vmem:[%s3653_s11 + $0x159] sm:$0xff] }
  0x21   : > { %v218_v20 = vld [vmem:[%s3653_s11 + $0x21] sm:$0xff]  ;;  %v3733_v24 = vld [vmem:[%s3653_s11 + $0x31] sm:$0xff]  ;;  %v3765_v31 = vld [vmem:[%s3653_s11 + $0x39] sm:$0xff] }
  0x22   : > { %v3780_v33 = vld [vmem:[%s3653_s11 + $0xa9] sm:$0xff]  ;;  %v3800_v37 = vld [vmem:[%s3653_s11 + $0xb1] sm:$0xff]  ;;  %v182_v41 = vld [vmem:[%s3653_s11] sm:$0xff] }
  0x23   : > { %2956 = vmatmul.msk.f32.gmra.mxu1 %vm249_vm1, %v3673_v9  ;;  %v3783_v34 = vld [vmem:[%s3653_s11 + $0x109] sm:$0xff]  ;;  %v3803_v38 = vld [vmem:[%s3653_s11 + $0x111] sm:$0xff]  ;;  %v3047_v46 = vld [vmem:[%s3653_s11 + $0x20] sm:$0xff] }
  0x24   : > { %2964 = vmatmul.msk.f32.gmra.mxu2 %vm249_vm1, %v3676_v10  ;;  %v3786_v35 = vld [vmem:[%s3653_s11 + $0x169] sm:$0xff]  ;;  %v3806_v39 = vld [vmem:[%s3653_s11 + $0x171] sm:$0xff]  ;;  %v3834_v47 = vld [vmem:[%s3653_s11 + $0x1a] sm:$0xff] }
  0x25   : > { %2972 = vmatmul.msk.f32.gmra.mxu3 %vm249_vm1, %v3679_v11  ;;  %v3789_v36 = vld [vmem:[%s3653_s11 + $0x49] sm:$0xff]  ;;  %v3809_v40 = vld [vmem:[%s3653_s11 + $0x51] sm:$0xff]  ;;  %v3874_v53 = vld [vmem:[%s3653_s11 + $0x3a] sm:$0xff] }
  0x26   : > { %2948 = vmatmul.msk.f32.gmra.mxu0 %vm249_vm1, %v216_v12  ;;  %v675_v42 = vld [vmem:[%s3653_s11 + $0x2] sm:$0xff]  ;;  %v3046_v43 = vld [vmem:[%s3653_s11 + $0x18] sm:$0xff]  ;;  %v676_v45 = vld [vmem:[%s3653_s11 + $0xa] sm:$0xff] }
  0x27   : > { %v183_v44 = vld [vmem:[%s3653_s11 + $0x8] sm:$0xff]  ;;  %v3837_v48 = vld [vmem:[%s3653_s11 + $0x30] sm:$0xff]  ;;  %v3850_v50 = vld [vmem:[%s3653_s11 + $0x38] sm:$0xff] }
  0x28   : > { %v3847_v49 = vld [vmem:[%s3653_s11 + $0x22] sm:$0xff]  ;;  %v3860_v51 = vld [vmem:[%s3653_s11 + $0x32] sm:$0xff]  ;;  %v3888_v55 = vld [vmem:[%s3653_s11 + $0x4a] sm:$0xff] }
  0x29   : > { %v3863_v52 = vld [vmem:[%s3653_s11 + $0x48] sm:$0xff]  ;;  %v3877_v54 = vld [vmem:[%s3653_s11 + $0x50] sm:$0xff]  ;;  %v3891_v56 = vld [vmem:[%s3653_s11 + $0x60] sm:$0xff] }
  0x2a   : > { %v3902_v57 = vld [vmem:[%s3653_s11 + $0x52] sm:$0xff]  ;;  %v3905_v58 = vld [vmem:[%s3653_s11 + $0x68] sm:$0xff]  ;;  %v3943_v3 = vld [vmem:[%s3653_s11 + $0x80] sm:$0xff] }
  0x2b   : > { %2957 = vmatmul.msk.f32.gmra.mxu1 %vm249_vm1, %v3690_v13  ;;  %4843 = vst [vmem:[#allocation5_spill] sm:$0xff] %v3905_v58  ;;  %v3918_v60 = vld [vmem:[%s3653_s11 + $0x62] sm:$0xff]  ;;  %v3921_v61 = vld [vmem:[%s3653_s11 + $0x78] sm:$0xff]  ;;  %v3940_v2 = vld [vmem:[%s3653_s11 + $0x6a] sm:$0xff] }
  0x2c   : > { %2965 = vmatmul.msk.f32.gmra.mxu2 %vm249_vm1, %v3693_v14  ;;  %4844 = vst [vmem:[#allocation6_spill] sm:$0xff] %v3921_v61  ;;  %v3962_v12 = vld [vmem:[%s3653_s11 + $0x7a] sm:$0xff]  ;;  %v3984_v26 = vld [vmem:[%s3653_s11 + $0x82] sm:$0xff] }
  0x2d   : > { %2973 = vmatmul.msk.f32.gmra.mxu3 %vm249_vm1, %v3696_v15  ;;  %4846 = vst [vmem:[#allocation8_spill] sm:$0xff] %v3940_v2  ;;  %v3987_v27 = vld [vmem:[%s3653_s11 + $0x98] sm:$0xff] }
  0x2e   : > { %2949 = vmatmul.msk.f32.gmra.mxu0 %vm249_vm1, %v217_v16  ;;  %4847 = vst [vmem:[#allocation9_spill] sm:$0xff] %v3943_v3 }
  0x2f   : > { %4849 = vst [vmem:[#allocation11_spill] sm:$0xff] %v3962_v12 }
  0x30   : > { %4852 = vst [vmem:[#allocation14_spill] sm:$0xff] %v3984_v26 }
  0x31   : > { %4853 = vst [vmem:[#allocation15_spill] sm:$0xff] %v3987_v27 }
  0x33   : > { %2958 = vmatmul.msk.f32.gmra.mxu1 %vm249_vm1, %v3707_v17 }
  0x34   : > { %2966 = vmatmul.msk.f32.gmra.mxu2 %vm249_vm1, %v3710_v18 }
  0x35   : > { %2974 = vmatmul.msk.f32.gmra.mxu3 %vm249_vm1, %v3713_v19 }
  0x36   : > { %2950 = vmatmul.msk.f32.gmra.mxu0 %vm249_vm1, %v218_v20 }
  0x3b   : > { %2959 = vmatmul.msk.f32.gmra.mxu1 %vm249_vm1, %v3724_v21 }
  0x3c   : > { %2967 = vmatmul.msk.f32.gmra.mxu2 %vm249_vm1, %v3727_v22 }
  0x3d   : > { %2975 = vmatmul.msk.f32.gmra.mxu3 %vm249_vm1, %v3730_v23 }
  0x3e   : > { %2951 = vmatmul.msk.f32.gmra.mxu0 %vm249_vm1, %v3733_v24 }
  0x43   : > { %2960 = vmatmul.msk.f32.gmra.mxu1 %vm249_vm1, %v3756_v28 }
  0x44   : > { %2968 = vmatmul.msk.f32.gmra.mxu2 %vm249_vm1, %v3759_v29 }
  0x45   : > { %2976 = vmatmul.msk.f32.gmra.mxu3 %vm249_vm1, %v3762_v30 }
  0x46   : > { %2952 = vmatmul.msk.f32.gmra.mxu0 %vm249_vm1, %v3765_v31 }
  0x4b   : > { %2961 = vmatmul.msk.f32.gmra.mxu1 %vm249_vm1, %v3780_v33 }
  0x4c   : > { %2969 = vmatmul.msk.f32.gmra.mxu2 %vm249_vm1, %v3783_v34 }
  0x4d   : > { %2977 = vmatmul.msk.f32.gmra.mxu3 %vm249_vm1, %v3786_v35 }
  0x4e   : > { %2953 = vmatmul.msk.f32.gmra.mxu0 %vm249_vm1, %v3789_v36 }
  0x53   : > { %2962 = vmatmul.msk.f32.gmra.mxu1 %vm249_vm1, %v3800_v37 }
  0x54   : > { %2970 = vmatmul.msk.f32.gmra.mxu2 %vm249_vm1, %v3803_v38 }
  0x55   : > { %2978 = vmatmul.msk.f32.gmra.mxu3 %vm249_vm1, %v3806_v39 }
  0x56   : > { %2954 = vmatmul.msk.f32.gmra.mxu0 %vm249_vm1, %v3809_v40 }
  0x5b   : > { %2980 = vmatmul.msk.f32.vlgmr.msrb.gmra.mxu1 %vm249_vm1, %v182_v41 }
  0x5c   : > { %3014 = vmatmul.msk.f32.vlgmr.msrb.gmra.mxu2 %vm249_vm1, %v675_v42 }
  0x5d   : > { %3080 = vmatmul.msk.f32.vlgmr.msrb.gmra.mxu3 %vm249_vm1, %v3046_v43 }
  0x5e   : > { %3146 = vmatmul.msk.f32.vlgmr.msrb.gmra.mxu0 %vm249_vm1, %v217_v16 }
  0x63   : > { %2981 = vmatmul.msk.f32.gmra.mxu1 %vm249_vm1, %v183_v44  ;;  %v4009_v44 = vld [vmem:[%s3653_s11 + $0xa8] sm:$0xff] }
  0x64   : > { %3015 = vmatmul.msk.f32.gmra.mxu2 %vm249_vm1, %v676_v45  ;;  %4856 = vst [vmem:[#allocation18_spill] sm:$0xff] %v4009_v44 }
  0x65   : > { %3081 = vmatmul.msk.f32.gmra.mxu3 %vm249_vm1, %v3047_v46 }
  0x66   : > { %3147 = vmatmul.msk.f32.gmra.mxu0 %vm249_vm1, %v218_v20 }
  0x6b   : > { %2982 = vmatmul.msk.f32.gmra.mxu1 %vm249_vm1, %v3046_v43  ;;  %v4006_v43 = vld [vmem:[%s3653_s11 + $0x92] sm:$0xff] }
  0x6c   : > { %3016 = vmatmul.msk.f32.gmra.mxu2 %vm249_vm1, %v3834_v47  ;;  %4855 = vst [vmem:[#allocation17_spill] sm:$0xff] %v4006_v43 }
  0x6d   : > { %3082 = vmatmul.msk.f32.gmra.mxu3 %vm249_vm1, %v3837_v48 }
  0x6e   : > { %3148 = vmatmul.msk.f32.gmra.mxu0 %vm249_vm1, %v3733_v24 }
  0x73   : > { %2983 = vmatmul.msk.f32.gmra.mxu1 %vm249_vm1, %v3047_v46 }
  0x74   : > { %3017 = vmatmul.msk.f32.gmra.mxu2 %vm249_vm1, %v3847_v49 }
  0x75   : > { %3083 = vmatmul.msk.f32.gmra.mxu3 %vm249_vm1, %v3850_v50 }
  0x76   : > { %3149 = vmatmul.msk.f32.gmra.mxu0 %vm249_vm1, %v3765_v31 }
  0x7b   : > { %2984 = vmatmul.msk.f32.gmra.mxu1 %vm249_vm1, %v3837_v48 }
  0x7c   : > { %3018 = vmatmul.msk.f32.gmra.mxu2 %vm249_vm1, %v3860_v51 }
  0x7d   : > { %3084 = vmatmul.msk.f32.gmra.mxu3 %vm249_vm1, %v3863_v52 }
  0x7e   : > { %3150 = vmatmul.msk.f32.gmra.mxu0 %vm249_vm1, %v3789_v36 }
  0x83   : > { %2985 = vmatmul.msk.f32.gmra.mxu1 %vm249_vm1, %v3850_v50 }
  0x84   : > { %3019 = vmatmul.msk.f32.gmra.mxu2 %vm249_vm1, %v3874_v53 }
  0x85   : > { %3085 = vmatmul.msk.f32.gmra.mxu3 %vm249_vm1, %v3877_v54 }
  0x86   : > { %3151 = vmatmul.msk.f32.gmra.mxu0 %vm249_vm1, %v3809_v40 }
  0x8b   : > { %2986 = vmatmul.msk.f32.gmra.mxu1 %vm249_vm1, %v3863_v52 }
  0x8c   : > { %3020 = vmatmul.msk.f32.gmra.mxu2 %vm249_vm1, %v3888_v55 }
  0x8d   : > { %3086 = vmatmul.msk.f32.gmra.mxu3 %vm249_vm1, %v3891_v56 }
  0x8e   : > { %3152 = vmatmul.msk.f32.gmra.mxu0 %vm249_vm1, %v3656_v5 }
  0x93   : > { %2987 = vmatmul.msk.f32.gmra.mxu1 %vm249_vm1, %v3877_v54 }
  0x94   : > { %3021 = vmatmul.msk.f32.gmra.mxu2 %vm249_vm1, %v3902_v57 }
  0x95   : > { %3087 = vmatmul.msk.f32.gmra.mxu3 %vm249_vm1, %v3905_v58 }
  0x96   : > { %3153 = vmatmul.msk.f32.gmra.mxu0 %vm249_vm1, %v3673_v9 }
  0x98   : > { %v3915_v59 = vpop.f32.mrf.mxu1 }
  0x9b   : > { %v3923_v62 = vpop.f32.mrf.mxu0  ;;  %2988 = vmatmul.msk.f32.gmra.mxu1 %vm249_vm1, %v3891_v56 }
  0x9c   : > { %3022 = vmatmul.msk.f32.gmra.mxu2 %vm249_vm1, %v3918_v60 }
  0x9d   : > { %3088 = vmatmul.msk.f32.gmra.mxu3 %vm249_vm1, %v3921_v61 }
  0x9e   : > { %3154 = vmatmul.msk.f32.gmra.mxu0 %vm249_vm1, %v3690_v13  ;;  %v3965_v13 = vld [vmem:[%s3653_s11 + $0x90] sm:$0xff] }
  0x9f   : > { %v3933_v63 = vpop.f32.mrf.mxu2  ;;  %4850 = vst [vmem:[#allocation12_spill] sm:$0xff] %v3965_v13 }
  0xa0   : > { %v3935_v0 = vpop.f32.mrf.mxu3  ;;  %v3937_v1 = vpop.f32.mrf.mxu1 }
  0xa1   : > { %4845 = vst [vmem:[#allocation7_spill] sm:$0xff] %v3935_v0 }
  0xa3   : > { %v3945_v4 = vpop.f32.mrf.mxu0  ;;  %2989 = vmatmul.msk.f32.gmra.mxu1 %vm249_vm1, %v3905_v58  ;;  %v4110_v58 = vld [vmem:[%s3653_s11 + $0xe0] sm:$0xff] }
  0xa4   : > { %3023 = vmatmul.msk.f32.gmra.mxu2 %vm249_vm1, %v3940_v2  ;;  %v4107_v2 = vld [vmem:[%s3653_s11 + $0xca] sm:$0xff] }
  0xa5   : > { %3089 = vmatmul.msk.f32.gmra.mxu3 %vm249_vm1, %v3943_v3 }
  0xa6   : > { %3155 = vmatmul.msk.f32.gmra.mxu0 %vm249_vm1, %v3707_v17 }
  0xa7   : > { %v3955_v5 = vpop.f32.mrf.mxu2 }
  0xa8   : > { %v3957_v8 = vpop.f32.mrf.mxu3  ;;  %v3959_v9 = vpop.f32.mrf.mxu1 }
  0xa9   : > { %4848 = vst [vmem:[#allocation10_spill] sm:$0xff] %v3957_v8  ;;  %v4031_v8 = vld [vmem:[%s3653_s11 + $0xb0] sm:$0xff] }
  0xaa   : > { %4860 = vst [vmem:[#allocation22_spill] sm:$0xff] %v4031_v8 }
  0xab   : > { %v3967_v16 = vpop.f32.mrf.mxu0  ;;  %2990 = vmatmul.msk.f32.gmra.mxu1 %vm249_vm1, %v3921_v61  ;;  %v4095_v61 = vld [vmem:[%s3653_s11 + $0xd8] sm:$0xff] }
  0xac   : > { %3024 = vmatmul.msk.f32.gmra.mxu2 %vm249_vm1, %v3962_v12 }
  0xad   : > { %3090 = vmatmul.msk.f32.gmra.mxu3 %vm249_vm1, %v3965_v13 }
  0xae   : > { %3156 = vmatmul.msk.f32.gmra.mxu0 %vm249_vm1, %v3724_v21 }
  0xaf   : > { %v3977_v17 = vpop.f32.mrf.mxu2 }
  0xb0   : > { %v3979_v20 = vpop.f32.mrf.mxu3  ;;  %v3981_v25 = vpop.f32.mrf.mxu1 }
  0xb1   : > { %4851 = vst [vmem:[#allocation13_spill] sm:$0xff] %v3979_v20  ;;  %v4028_v20 = vld [vmem:[%s3653_s11 + $0x9a] sm:$0xff] }
  0xb2   : > { %4859 = vst [vmem:[#allocation21_spill] sm:$0xff] %v4028_v20 }
  0xb3   : > { %v3989_v32 = vpop.f32.mrf.mxu0  ;;  %2991 = vmatmul.msk.f32.gmra.mxu1 %vm249_vm1, %v3943_v3  ;;  %v4072_v3 = vld [vmem:[%s3653_s11 + $0xb2] sm:$0xff] }
  0xb4   : > { %3025 = vmatmul.msk.f32.gmra.mxu2 %vm249_vm1, %v3984_v26  ;;  %4867 = vst [vmem:[#allocation29_spill] sm:$0xff] %v4072_v3 }
  0xb5   : > { %3091 = vmatmul.msk.f32.gmra.mxu3 %vm249_vm1, %v3987_v27 }
  0xb6   : > { %3157 = vmatmul.msk.f32.gmra.mxu0 %vm249_vm1, %v3756_v28 }
  0xb7   : > { %v3999_v21 = vpop.f32.mrf.mxu2 }
  0xb8   : > { %v4001_v41 = vpop.f32.mrf.mxu3  ;;  %v4003_v42 = vpop.f32.mrf.mxu1 }
  0xb9   : > { %4854 = vst [vmem:[#allocation16_spill] sm:$0xff] %v4001_v41 }
  0xbb   : > { %v4011_v45 = vpop.f32.mrf.mxu0  ;;  %2992 = vmatmul.msk.f32.gmra.mxu1 %vm249_vm1, %v3965_v13  ;;  %v4050_v13 = vld [vmem:[%s3653_s11 + $0xaa] sm:$0xff] }
  0xbc   : > { %3026 = vmatmul.msk.f32.gmra.mxu2 %vm249_vm1, %v4006_v43  ;;  %4863 = vst [vmem:[#allocation25_spill] sm:$0xff] %v4050_v13 }
  0xbd   : > { %3092 = vmatmul.msk.f32.gmra.mxu3 %vm249_vm1, %v4009_v44 }
  0xbe   : > { %3158 = vmatmul.msk.f32.gmra.mxu0 %vm249_vm1, %v3780_v33 }
  0xbf   : > { %v4021_v28 = vpop.f32.mrf.mxu2 }
  0xc0   : > { %4857 = vst [vmem:[#allocation19_spill] sm:$0xff] %v4021_v28  ;;  %v4023_v46 = vpop.f32.mrf.mxu3  ;;  %v4025_v41 = vpop.f32.mrf.mxu1 }
  0xc1   : > { %4858 = vst [vmem:[#allocation20_spill] sm:$0xff] %v4023_v46 }
  0xc3   : > { %v4033_v0 = vpop.f32.mrf.mxu0  ;;  %2993 = vmatmul.msk.f32.gmra.mxu1 %vm249_vm1, %v3987_v27  ;;  %v4053_v27 = vld [vmem:[%s3653_s11 + $0xc0] sm:$0xff] }
  0xc4   : > { %3027 = vmatmul.msk.f32.gmra.mxu2 %vm249_vm1, %v4028_v20  ;;  %4864 = vst [vmem:[#allocation26_spill] sm:$0xff] %v4053_v27 }
  0xc5   : > { %3093 = vmatmul.msk.f32.gmra.mxu3 %vm249_vm1, %v4031_v8 }
  0xc6   : > { %3159 = vmatmul.msk.f32.gmra.mxu0 %vm249_vm1, %v3800_v37 }
  0xc7   : > { %v4043_v33 = vpop.f32.mrf.mxu2 }
  0xc8   : > { %4861 = vst [vmem:[#allocation23_spill] sm:$0xff] %v4043_v33  ;;  %v4045_v46 = vpop.f32.mrf.mxu3  ;;  %v4047_v43 = vpop.f32.mrf.mxu1 }
  0xc9   : > { %4862 = vst [vmem:[#allocation24_spill] sm:$0xff] %v4045_v46 }
  0xcb   : > { %v4055_v26 = vpop.f32.mrf.mxu0  ;;  %2994 = vmatmul.msk.f32.gmra.mxu1 %vm249_vm1, %v4009_v44  ;;  %v4075_v44 = vld [vmem:[%s3653_s11 + $0xc8] sm:$0xff] }
  0xcc   : > { %3028 = vmatmul.msk.f32.gmra.mxu2 %vm249_vm1, %v4050_v13 }
  0xcd   : > { %3094 = vmatmul.msk.f32.gmra.mxu3 %vm249_vm1, %v4053_v27 }
  0xce   : > { %3160 = vmatmul.msk.f32.gmra.mxu0 %vm249_vm1, %v3659_v6 }
  0xcf   : > { %v4065_v37 = vpop.f32.mrf.mxu2 }
  0xd0   : > { %4865 = vst [vmem:[#allocation27_spill] sm:$0xff] %v4065_v37  ;;  %v4067_v46 = vpop.f32.mrf.mxu3  ;;  %v4069_v20 = vpop.f32.mrf.mxu1  ;;  %v4092_v37 = vld [vmem:[%s3653_s11 + $0xc2] sm:$0xff] }
  0xd1   : > { %4866 = vst [vmem:[#allocation28_spill] sm:$0xff] %v4067_v46 }
  0xd2   : > { %4870 = vst [vmem:[#allocation32_spill] sm:$0xff] %v4092_v37 }
  0xd3   : > { %v4077_v12 = vpop.f32.mrf.mxu0  ;;  %2995 = vmatmul.msk.f32.gmra.mxu1 %vm249_vm1, %v4031_v8 }
  0xd4   : > { %3029 = vmatmul.msk.f32.gmra.mxu2 %vm249_vm1, %v4072_v3 }
  0xd5   : > { %3095 = vmatmul.msk.f32.gmra.mxu3 %vm249_vm1, %v4075_v44 }
  0xd6   : > { %3161 = vmatmul.msk.f32.gmra.mxu0 %vm249_vm1, %v3676_v10 }
  0xd7   : > { %v4087_v6 = vpop.f32.mrf.mxu2 }
  0xd8   : > { %4868 = vst [vmem:[#allocation30_spill] sm:$0xff] %v4087_v6  ;;  %v4089_v46 = vpop.f32.mrf.mxu3  ;;  %v579_v13 = vpop.f32.mrf.mxu1 }
  0xd9   : > { %4869 = vst [vmem:[#allocation31_spill] sm:$0xff] %v4089_v46  ;;  %v580_v10 = vadd.f32 %v579_v13, %v3923_v62 }
  0xdb   : > { %v1382_v8 = vpop.f32.mrf.mxu0  ;;  %2996 = vmatmul.msk.f32.gmra.mxu1 %vm249_vm1, %v4053_v27 }
  0xdc   : > { %3030 = vmatmul.msk.f32.gmra.mxu2 %vm249_vm1, %v4092_v37 }
  0xdd   : > { %3096 = vmatmul.msk.f32.gmra.mxu3 %vm249_vm1, %v4095_v61 }
  0xde   : > { %3162 = vmatmul.msk.f32.gmra.mxu0 %vm249_vm1, %v3693_v14 }
  0xdf   : > { %v825_v46 = vpop.f32.mrf.mxu2 }
  0xe0   : > { %v921_v3 = vadd.f32 %v825_v46, %v580_v10  ;;  %v1104_v6 = vpop.f32.mrf.mxu3  ;;  %v582_v33 = vpop.f32.mrf.mxu1 }
  0xe1   : > { %v583_v14 = vadd.f32 %v582_v33, %v3945_v4 }
  0xe2   : > { %v1200_v27 = vadd.f32 %v1104_v6, %v921_v3  ;;  %v4127_v6 = vld [vmem:[%s3653_s11 + $0xf0] sm:$0xff] }
  0xe3   : > { %v1385_v37 = vpop.f32.mrf.mxu0  ;;  %2997 = vmatmul.msk.f32.gmra.mxu1 %vm249_vm1, %v4075_v44 }
  0xe4   : > { %v4112_v28 = vadd.f32 %v1382_v8, %v1200_v27  ;;  %3031 = vmatmul.msk.f32.gmra.mxu2 %vm249_vm1, %v4107_v2  ;;  %v4124_v27 = vld [vmem:[%s3653_s11 + $0xda] sm:$0xff] }
  0xe5   : > { %3097 = vmatmul.msk.f32.gmra.mxu3 %vm249_vm1, %v4110_v58 }
  0xe6   : > { %4871 = vst [vmem:[#allocation33_spill] sm:$0xff] %v4112_v28  ;;  %3163 = vmatmul.msk.f32.gmra.mxu0 %vm249_vm1, %v3710_v18 }
  0xe7   : > { %v828_v62 = vpop.f32.mrf.mxu2 }
  0xe8   : > { %v922_v3 = vadd.f32 %v828_v62, %v583_v14  ;;  %v1107_v13 = vpop.f32.mrf.mxu3  ;;  %v585_v8 = vpop.f32.mrf.mxu1  ;;  %v4141_v62 = vld [vmem:[%s3653_s11 + $0xe2] sm:$0xff] }
  0xe9   : > { %v586_v18 = vadd.f32 %v585_v8, %v3967_v16 }
  0xea   : > { %v1201_v46 = vadd.f32 %v1107_v13, %v922_v3  ;;  %v4144_v13 = vld [vmem:[%s3653_s11 + $0xf8] sm:$0xff] }
  0xeb   : > { %v1388_v10 = vpop.f32.mrf.mxu0  ;;  %2998 = vmatmul.msk.f32.gmra.mxu1 %vm249_vm1, %v4095_v61 }
  0xec   : > { %v4129_v28 = vadd.f32 %v1385_v37, %v1201_v46  ;;  %3032 = vmatmul.msk.f32.gmra.mxu2 %vm249_vm1, %v4124_v27 }
  0xed   : > { %3098 = vmatmul.msk.f32.gmra.mxu3 %vm249_vm1, %v4127_v6 }
  0xee   : > { %4872 = vst [vmem:[#allocation34_spill] sm:$0xff] %v4129_v28  ;;  %3164 = vmatmul.msk.f32.gmra.mxu0 %vm249_vm1, %v3727_v22 }
  0xef   : > { %v831_v4 = vpop.f32.mrf.mxu2 }
  0xf0   : > { %v923_v33 = vadd.f32 %v831_v4, %v586_v18  ;;  %v1110_v14 = vpop.f32.mrf.mxu3  ;;  %v588_v37 = vpop.f32.mrf.mxu1  ;;  %v4158_v4 = vld [vmem:[%s3653_s11 + $0xf2] sm:$0xff] }
  0xf1   : > { %v589_v22 = vadd.f32 %v588_v37, %v3989_v32 }
  0xf2   : > { %v1202_v3 = vadd.f32 %v1110_v14, %v923_v33  ;;  %v4161_v14 = vld [vmem:[%s3653_s11 + $0x108] sm:$0xff] }
  0xf3   : > { %v1391_v46 = vpop.f32.mrf.mxu0  ;;  %2999 = vmatmul.msk.f32.gmra.mxu1 %vm249_vm1, %v4110_v58 }
  0xf4   : > { %v4146_v28 = vadd.f32 %v1388_v10, %v1202_v3  ;;  %3033 = vmatmul.msk.f32.gmra.mxu2 %vm249_vm1, %v4141_v62 }
  0xf5   : > { %3099 = vmatmul.msk.f32.gmra.mxu3 %vm249_vm1, %v4144_v13 }
  0xf6   : > { %4873 = vst [vmem:[#allocation35_spill] sm:$0xff] %v4146_v28  ;;  %3165 = vmatmul.msk.f32.gmra.mxu0 %vm249_vm1, %v3759_v29 }
  0xf7   : > { %v834_v16 = vpop.f32.mrf.mxu2 }
  0xf8   : > { %v924_v8 = vadd.f32 %v834_v16, %v589_v22  ;;  %v1113_v18 = vpop.f32.mrf.mxu3  ;;  %v591_v10 = vpop.f32.mrf.mxu1  ;;  %v4175_v16 = vld [vmem:[%s3653_s11 + $0xfa] sm:$0xff] }
  0xf9   : > { %v592_v29 = vadd.f32 %v591_v10, %v4011_v45 }
  0xfa   : > { %v1203_v33 = vadd.f32 %v1113_v18, %v924_v8  ;;  %v4178_v18 = vld [vmem:[%s3653_s11 + $0x110] sm:$0xff] }
  0xfb   : > { %v1394_v3 = vpop.f32.mrf.mxu0  ;;  %3000 = vmatmul.msk.f32.gmra.mxu1 %vm249_vm1, %v4127_v6 }
  0xfc   : > { %v4163_v28 = vadd.f32 %v1391_v46, %v1203_v33  ;;  %3034 = vmatmul.msk.f32.gmra.mxu2 %vm249_vm1, %v4158_v4 }
  0xfd   : > { %3100 = vmatmul.msk.f32.gmra.mxu3 %vm249_vm1, %v4161_v14 }
  0xfe   : > { %4874 = vst [vmem:[#allocation36_spill] sm:$0xff] %v4163_v28  ;;  %3166 = vmatmul.msk.f32.gmra.mxu0 %vm249_vm1, %v3783_v34 }
  0xff   : > { %v837_v32 = vpop.f32.mrf.mxu2 }
 0x100   : > { %v925_v37 = vadd.f32 %v837_v32, %v592_v29  ;;  %v1116_v22 = vpop.f32.mrf.mxu3  ;;  %v594_v46 = vpop.f32.mrf.mxu1  ;;  %v4192_v32 = vld [vmem:[%s3653_s11 + $0x10a] sm:$0xff] }
 0x101   : > { %v595_v34 = vadd.f32 %v594_v46, %v4033_v0 }
 0x102   : > { %v1204_v8 = vadd.f32 %v1116_v22, %v925_v37  ;;  %v4195_v22 = vld [vmem:[%s3653_s11 + $0x120] sm:$0xff] }
 0x103   : > { %v1397_v33 = vpop.f32.mrf.mxu0  ;;  %3001 = vmatmul.msk.f32.gmra.mxu1 %vm249_vm1, %v4144_v13 }
 0x104   : > { %v4180_v28 = vadd.f32 %v1394_v3, %v1204_v8  ;;  %3035 = vmatmul.msk.f32.gmra.mxu2 %vm249_vm1, %v4175_v16 }
 0x105   : > { %3101 = vmatmul.msk.f32.gmra.mxu3 %vm249_vm1, %v4178_v18 }
 0x106   : > { %4875 = vst [vmem:[#allocation37_spill] sm:$0xff] %v4180_v28  ;;  %3167 = vmatmul.msk.f32.gmra.mxu0 %vm249_vm1, %v3803_v38 }
 0x107   : > { %v840_v45 = vpop.f32.mrf.mxu2 }
 0x108   : > { %v926_v10 = vadd.f32 %v840_v45, %v595_v34  ;;  %v1119_v29 = vpop.f32.mrf.mxu3  ;;  %v597_v3 = vpop.f32.mrf.mxu1  ;;  %v4209_v45 = vld [vmem:[%s3653_s11 + $0x112] sm:$0xff] }
 0x109   : > { %v598_v38 = vadd.f32 %v597_v3, %v4055_v26 }
 0x10a   : > { %v1205_v37 = vadd.f32 %v1119_v29, %v926_v10  ;;  %v4212_v29 = vld [vmem:[%s3653_s11 + $0x128] sm:$0xff] }
 0x10b   : > { %v1400_v8 = vpop.f32.mrf.mxu0  ;;  %3002 = vmatmul.msk.f32.gmra.mxu1 %vm249_vm1, %v4161_v14 }
 0x10c   : > { %v4197_v28 = vadd.f32 %v1397_v33, %v1205_v37  ;;  %3036 = vmatmul.msk.f32.gmra.mxu2 %vm249_vm1, %v4192_v32 }
 0x10d   : > { %3102 = vmatmul.msk.f32.gmra.mxu3 %vm249_vm1, %v4195_v22 }
 0x10e   : > { %4876 = vst [vmem:[#allocation38_spill] sm:$0xff] %v4197_v28  ;;  %3168 = vmatmul.msk.f32.gmra.mxu0 %vm249_vm1, %v3662_v7 }
 0x10f   : > { %v843_v0 = vpop.f32.mrf.mxu2 }
 0x110   : > { %v927_v46 = vadd.f32 %v843_v0, %v598_v38  ;;  %v1122_v34 = vpop.f32.mrf.mxu3  ;;  %v600_v33 = vpop.f32.mrf.mxu1  ;;  %v4226_v0 = vld [vmem:[%s3653_s11 + $0x122] sm:$0xff] }
 0x111   : > { %v601_v7 = vadd.f32 %v600_v33, %v4077_v12 }
 0x112   : > { %v1206_v10 = vadd.f32 %v1122_v34, %v927_v46  ;;  %v3070_v34 = vld [vmem:[%s3653_s11 + $0x138] sm:$0xff] }
 0x113   : > { %v1403_v37 = vpop.f32.mrf.mxu0  ;;  %3003 = vmatmul.msk.f32.gmra.mxu1 %vm249_vm1, %v4178_v18 }
 0x114   : > { %v4214_v28 = vadd.f32 %v1400_v8, %v1206_v10  ;;  %3037 = vmatmul.msk.f32.gmra.mxu2 %vm249_vm1, %v4209_v45 }
 0x115   : > { %3103 = vmatmul.msk.f32.gmra.mxu3 %vm249_vm1, %v4212_v29 }
 0x116   : > { %4877 = vst [vmem:[#allocation39_spill] sm:$0xff] %v4214_v28  ;;  %3169 = vmatmul.msk.f32.gmra.mxu0 %vm249_vm1, %v3679_v11 }
 0x117   : > { %v846_v26 = vpop.f32.mrf.mxu2 }
 0x118   : > { %v928_v3 = vadd.f32 %v846_v26, %v601_v7  ;;  %v1125_v38 = vpop.f32.mrf.mxu3  ;;  %v603_v8 = vpop.f32.mrf.mxu1 }
 0x119   : > { %v604_v11 = vadd.f32 %v603_v8, %v3915_v59 }
 0x11a   : > { %v1207_v46 = vadd.f32 %v1125_v38, %v928_v3  ;;  %v3071_v38 = vld [vmem:[%s3653_s11 + $0x140] sm:$0xff] }
 0x11b   : > { %v1406_v10 = vpop.f32.mrf.mxu0  ;;  %3004 = vmatmul.msk.f32.gmra.mxu1 %vm249_vm1, %v4195_v22 }
 0x11c   : > { %v4229_v28 = vadd.f32 %v1403_v37, %v1207_v46  ;;  %3038 = vmatmul.msk.f32.gmra.mxu2 %vm249_vm1, %v4226_v0  ;;  %v4240_v37 = vld [vmem:[%s3653_s11 + $0x12a] sm:$0xff] }
 0x11d   : > { %3104 = vmatmul.msk.f32.gmra.mxu3 %vm249_vm1, %v3070_v34 }
 0x11e   : > { %4878 = vst [vmem:[#allocation40_spill] sm:$0xff] %v4229_v28  ;;  %3170 = vmatmul.msk.f32.gmra.mxu0 %vm249_vm1, %v3696_v15 }
 0x11f   : > { %v849_v12 = vpop.f32.mrf.mxu2 }
 0x120   : > { %v929_v33 = vadd.f32 %v849_v12, %v604_v11  ;;  %v1128_v7 = vpop.f32.mrf.mxu3  ;;  %v606_v26 = vpop.f32.mrf.mxu1 }
 0x121   : > { %v607_v15 = vadd.f32 %v606_v26, %v3937_v1 }
 0x122   : > { %v1208_v3 = vadd.f32 %v1128_v7, %v929_v33  ;;  %v3072_v7 = vld [vmem:[%s3653_s11 + $0x150] sm:$0xff] }
 0x123   : > { %v1409_v46 = vpop.f32.mrf.mxu0  ;;  %3005 = vmatmul.msk.f32.gmra.mxu1 %vm249_vm1, %v4212_v29 }
 0x124   : > { %v4243_v28 = vadd.f32 %v1406_v10, %v1208_v3  ;;  %3039 = vmatmul.msk.f32.gmra.mxu2 %vm249_vm1, %v4240_v37  ;;  %v4254_v10 = vld [vmem:[%s3653_s11 + $0x13a] sm:$0xff] }
 0x125   : > { %3105 = vmatmul.msk.f32.gmra.mxu3 %vm249_vm1, %v3071_v38 }
 0x126   : > { %4879 = vst [vmem:[#allocation41_spill] sm:$0xff] %v4243_v28  ;;  %3171 = vmatmul.msk.f32.gmra.mxu0 %vm249_vm1, %v3713_v19 }
 0x127   : > { %v852_v59 = vpop.f32.mrf.mxu2 }
 0x128   : > { %v930_v8 = vadd.f32 %v852_v59, %v607_v15  ;;  %v1131_v11 = vpop.f32.mrf.mxu3  ;;  %v609_v12 = vpop.f32.mrf.mxu1 }
 0x129   : > { %v610_v19 = vadd.f32 %v609_v12, %v3959_v9 }
 0x12a   : > { %v1209_v33 = vadd.f32 %v1131_v11, %v930_v8  ;;  %v702_v8 = vld [vmem:[%s3653_s11 + $0x142] sm:$0xff]  ;;  %v3073_v11 = vld [vmem:[%s3653_s11 + $0x158] sm:$0xff] }
 0x12b   : > { %v1412_v3 = vpop.f32.mrf.mxu0  ;;  %3006 = vmatmul.msk.f32.gmra.mxu1 %vm249_vm1, %v3070_v34 }
 0x12c   : > { %v4257_v28 = vadd.f32 %v1409_v46, %v1209_v33  ;;  %3040 = vmatmul.msk.f32.gmra.mxu2 %vm249_vm1, %v4254_v10 }
 0x12d   : > { %3106 = vmatmul.msk.f32.gmra.mxu3 %vm249_vm1, %v3072_v7 }
 0x12e   : > { %3172 = vmatmul.msk.f32.gmra.mxu0 %vm249_vm1, %v3730_v23 }
 0x12f   : > { %v855_v1 = vpop.f32.mrf.mxu2 }
 0x130   : > { %v931_v26 = vadd.f32 %v855_v1, %v610_v19  ;;  %v1134_v15 = vpop.f32.mrf.mxu3  ;;  %v612_v59 = vpop.f32.mrf.mxu1 }
 0x131   : > { %v613_v23 = vadd.f32 %v612_v59, %v3981_v25 }
 0x132   : > { %v1210_v46 = vadd.f32 %v1134_v15, %v931_v26  ;;  %v703_v26 = vld [vmem:[%s3653_s11 + $0x152] sm:$0xff]  ;;  %v3074_v15 = vld [vmem:[%s3653_s11 + $0x168] sm:$0xff] }
 0x133   : > { %v1415_v34 = vpop.f32.mrf.mxu0  ;;  %3007 = vmatmul.msk.f32.gmra.mxu1 %vm249_vm1, %v3071_v38 }
 0x134   : > { %v4268_v33 = vadd.f32 %v1412_v3, %v1210_v46  ;;  %3041 = vmatmul.msk.f32.gmra.mxu2 %vm249_vm1, %v702_v8 }
 0x135   : > { %3107 = vmatmul.msk.f32.gmra.mxu3 %vm249_vm1, %v3073_v11 }
 0x136   : > { %3173 = vmatmul.msk.f32.gmra.mxu0 %vm249_vm1, %v3762_v30 }
 0x137   : > { %v858_v9 = vpop.f32.mrf.mxu2 }
 0x138   : > { %v932_v12 = vadd.f32 %v858_v9, %v613_v23  ;;  %v1137_v19 = vpop.f32.mrf.mxu3  ;;  %v615_v1 = vpop.f32.mrf.mxu1  ;;  %v704_v9 = vld [vmem:[%s3653_s11 + $0x15a] sm:$0xff] }
 0x139   : > { %v616_v30 = vadd.f32 %v615_v1, %v4003_v42 }
 0x13a   : > { %v1211_v3 = vadd.f32 %v1137_v19, %v932_v12  ;;  %v3075_v12 = vld [vmem:[%s3653_s11 + $0x170] sm:$0xff] }
 0x13b   : > { %v1418_v46 = vpop.f32.mrf.mxu0  ;;  %3008 = vmatmul.msk.f32.gmra.mxu1 %vm249_vm1, %v3072_v7 }
 0x13c   : > { %v4278_v38 = vadd.f32 %v1415_v34, %v1211_v3  ;;  %3042 = vmatmul.msk.f32.gmra.mxu2 %vm249_vm1, %v703_v26 }
 0x13d   : > { %3108 = vmatmul.msk.f32.gmra.mxu3 %vm249_vm1, %v3074_v15 }
 0x13e   : > { %3174 = vmatmul.msk.f32.gmra.mxu0 %vm249_vm1, %v3786_v35 }
 0x13f   : > { %v861_v25 = vpop.f32.mrf.mxu2 }
 0x140   : > { %v933_v59 = vadd.f32 %v861_v25, %v616_v30  ;;  %v1140_v8 = vpop.f32.mrf.mxu3  ;;  %v618_v23 = vpop.f32.mrf.mxu1  ;;  %v705_v30 = vld [vmem:[%s3653_s11 + $0x16a] sm:$0xff] }
 0x141   : > { %v619_v35 = vadd.f32 %v618_v23, %v4025_v41 }
 0x142   : > { %v1212_v34 = vadd.f32 %v1140_v8, %v933_v59 }
 0x143   : > { %v1421_v7 = vpop.f32.mrf.mxu0  ;;  %3009 = vmatmul.msk.f32.gmra.mxu1 %vm249_vm1, %v3073_v11  ;;  %v3142_v11 = vld [vmem:[%s3653_s11 + $0x181] sm:$0xff] }
 0x144   : > { %v4288_v19 = vadd.f32 %v1418_v46, %v1212_v34  ;;  %3043 = vmatmul.msk.f32.gmra.mxu2 %vm249_vm1, %v704_v9  ;;  %v3076_v46 = vld [vmem:[%s3653_s11 + $0x180] sm:$0xff] }
 0x145   : > { %3109 = vmatmul.msk.f32.gmra.mxu3 %vm249_vm1, %v3075_v12 }
 0x146   : > { %3175 = vmatmul.msk.f32.gmra.mxu0 %vm249_vm1, %v3806_v39 }
 0x147   : > { %v864_v42 = vpop.f32.mrf.mxu2 }
 0x148   : > { %v934_v1 = vadd.f32 %v864_v42, %v619_v35  ;;  %v1143_v26 = vpop.f32.mrf.mxu3  ;;  %v621_v3 = vpop.f32.mrf.mxu1  ;;  %v706_v35 = vld [vmem:[%s3653_s11 + $0x172] sm:$0xff] }
 0x149   : > { %v622_v39 = vadd.f32 %v621_v3, %v4047_v43 }
 0x14a   : > { %v1213_v25 = vadd.f32 %v1143_v26, %v934_v1  ;;  %v3077_v1 = vld [vmem:[%s3653_s11 + $0x188] sm:$0xff] }
 0x14b   : > { %v1424_v59 = vpop.f32.mrf.mxu0  ;;  %3010 = vmatmul.msk.f32.gmra.mxu1 %vm249_vm1, %v3074_v15 }
 0x14c   : > { %v4299_v8 = vadd.f32 %v1421_v7, %v1213_v25  ;;  %3044 = vmatmul.msk.f32.gmra.mxu2 %vm249_vm1, %v705_v30  ;;  %v3143_v7 = vld [vmem:[%s3653_s11 + $0x189] sm:$0xff] }
 0x14d   : > { %3110 = vmatmul.msk.f32.gmra.mxu3 %vm249_vm1, %v3076_v46 }
 0x14e   : > { %3176 = vmatmul.msk.f32.gmra.mxu0 %vm249_vm1, %v3142_v11 }
 0x14f   : > { %v867_v41 = vpop.f32.mrf.mxu2 }
 0x150   : > { %v935_v23 = vadd.f32 %v867_v41, %v622_v39  ;;  %v1146_v9 = vpop.f32.mrf.mxu3  ;;  %v624_v34 = vpop.f32.mrf.mxu1 }
 0x151   : > { %v625_v43 = vadd.f32 %v624_v34, %v4069_v20 }
 0x152   : > { %v1214_v42 = vadd.f32 %v1146_v9, %v935_v23 }
 0x153   : > { %v1427_v26 = vpop.f32.mrf.mxu0  ;;  %3011 = vmatmul.msk.f32.gmra.mxu1 %vm249_vm1, %v3075_v12 }
 0x154   : > { %v4309_v25 = vadd.f32 %v1424_v59, %v1214_v42  ;;  %3045 = vmatmul.msk.f32.gmra.mxu2 %vm249_vm1, %v706_v35 }
 0x155   : > { %3111 = vmatmul.msk.f32.gmra.mxu3 %vm249_vm1, %v3077_v1 }
 0x156   : > { %3177 = vmatmul.msk.f32.gmra.mxu0 %vm249_vm1, %v3143_v7 }
 0x157   : > { %v870_v15 = vpop.f32.mrf.mxu2 }
 0x158   : > { %v936_v3 = vadd.f32 %v870_v15, %v625_v43  ;;  %v1149_v30 = vpop.f32.mrf.mxu3  ;;  %v627_v46 = vpop.f32.mrf.mxu1 }
 0x159   : > { %v628_v20 = vadd.f32 %v627_v46, %v3933_v63 }
 0x15a   : > { %v1215_v11 = vadd.f32 %v1149_v30, %v936_v3 }
 0x15b   : > { %v1430_v39 = vpop.f32.mrf.mxu0  ;;  %3212 = vmatmul.msk.f32.vlgmr.msra.gmra.mxu1 %vm249_vm1, %v3834_v47 }
 0x15c   : > { %v4316_v41 = vadd.f32 %v1427_v26, %v1215_v11  ;;  %3278 = vmatmul.msk.f32.vlgmr.msra.gmra.mxu2 %vm249_vm1, %v3837_v48 }
 0x15d   : > { %3344 = vmatmul.msk.f32.vlgmr.msra.gmra.mxu3 %vm249_vm1, %v3733_v24 }
 0x15e   : > { %3410 = vmatmul.msk.f32.vlgmr.msra.gmra.mxu0 %vm249_vm1, %v3860_v51 }
 0x15f   : > { %v873_v12 = vpop.f32.mrf.mxu2 }
 0x160   : > { %v937_v59 = vadd.f32 %v873_v12, %v628_v20  ;;  %v1152_v23 = vpop.f32.mrf.mxu3  ;;  %v630_v9 = vpop.f32.mrf.mxu1  ;;  %v3314_v20 = vld [vmem:[%s3653_s11 + $0x61] sm:$0xff] }
 0x161   : > { %v631_v24 = vadd.f32 %v630_v9, %v3955_v5 }
 0x162   : > { %v1216_v34 = vadd.f32 %v1152_v23, %v937_v59 }
 0x163   : > { %v1433_v35 = vpop.f32.mrf.mxu0  ;;  %3213 = vmatmul.msk.f32.gmra.mxu1 %vm249_vm1, %v3847_v49 }
 0x164   : > { %v4327_v42 = vadd.f32 %v1430_v39, %v1216_v34  ;;  %3279 = vmatmul.msk.f32.gmra.mxu2 %vm249_vm1, %v3850_v50 }
 0x165   : > { %3345 = vmatmul.msk.f32.gmra.mxu3 %vm249_vm1, %v3765_v31 }
 0x166   : > { %3411 = vmatmul.msk.f32.gmra.mxu0 %vm249_vm1, %v3874_v53 }
 0x167   : > { %v876_v47 = vpop.f32.mrf.mxu2 }
 0x168   : > { %v938_v48 = vadd.f32 %v876_v47, %v631_v24  ;;  %v1155_v63 = vpop.f32.mrf.mxu3  ;;  %v633_v1 = vpop.f32.mrf.mxu1 }
 0x169   : > { %v634_v31 = vadd.f32 %v633_v1, %v3977_v17 }
 0x16a   : > { %v1217_v26 = vadd.f32 %v1155_v63, %v938_v48  ;;  %v4883_v48 = vld [vmem:[#allocation23_spill] sm:$0xff] }
 0x16b   : > { %v1436_v7 = vpop.f32.mrf.mxu0  ;;  %3214 = vmatmul.msk.f32.gmra.mxu1 %vm249_vm1, %v3860_v51 }
 0x16c   : > { %v4338_v43 = vadd.f32 %v1433_v35, %v1217_v26  ;;  %3280 = vmatmul.msk.f32.gmra.mxu2 %vm249_vm1, %v3863_v52  ;;  %v3315_v35 = vld [vmem:[%s3653_s11 + $0x69] sm:$0xff] }
 0x16d   : > { %3346 = vmatmul.msk.f32.gmra.mxu3 %vm249_vm1, %v3789_v36 }
 0x16e   : > { %3412 = vmatmul.msk.f32.gmra.mxu0 %vm249_vm1, %v3888_v55 }
 0x16f   : > { %v879_v49 = vpop.f32.mrf.mxu2 }
 0x170   : > { %v939_v50 = vadd.f32 %v879_v49, %v634_v31  ;;  %v1158_v5 = vpop.f32.mrf.mxu3  ;;  %v636_v15 = vpop.f32.mrf.mxu1 }
 0x171   : > { %v637_v36 = vadd.f32 %v636_v15, %v3999_v21 }
 0x172   : > { %v1218_v3 = vadd.f32 %v1158_v5, %v939_v50  ;;  %v3316_v50 = vld [vmem:[%s3653_s11 + $0x79] sm:$0xff] }
 0x173   : > { %v1439_v30 = vpop.f32.mrf.mxu0  ;;  %3215 = vmatmul.msk.f32.gmra.mxu1 %vm249_vm1, %v3874_v53 }
 0x174   : > { %v4349_v46 = vadd.f32 %v1436_v7, %v1218_v3  ;;  %3281 = vmatmul.msk.f32.gmra.mxu2 %vm249_vm1, %v3877_v54  ;;  %v4885_v3 = vld [vmem:[#allocation11_spill] sm:$0xff] }
 0x175   : > { %3347 = vmatmul.msk.f32.gmra.mxu3 %vm249_vm1, %v3809_v40  ;;  %v4880_v40 = vld [vmem:[#allocation19_spill] sm:$0xff] }
 0x176   : > { %3413 = vmatmul.msk.f32.gmra.mxu0 %vm249_vm1, %v3902_v57 }
 0x177   : > { %v882_v51 = vpop.f32.mrf.mxu2 }
 0x178   : > { %v940_v52 = vadd.f32 %v882_v51, %v637_v36  ;;  %v1161_v17 = vpop.f32.mrf.mxu3  ;;  %v639_v11 = vpop.f32.mrf.mxu1 }
 0x179   : > { %v640_v54 = vadd.f32 %v639_v11, %v4880_v40 }
 0x17a   : > { %v1219_v39 = vadd.f32 %v1161_v17, %v940_v52 }
 0x17b   : > { %v1442_v12 = vpop.f32.mrf.mxu0  ;;  %3216 = vmatmul.msk.f32.gmra.mxu1 %vm249_vm1, %v3888_v55  ;;  %v4881_v55 = vld [vmem:[#allocation5_spill] sm:$0xff] }
 0x17c   : > { %v4361_v53 = vadd.f32 %v1439_v30, %v1219_v39  ;;  %3282 = vmatmul.msk.f32.gmra.mxu2 %vm249_vm1, %v3891_v56  ;;  %v4882_v56 = vld [vmem:[#allocation8_spill] sm:$0xff]  ;;  %v4886_v30 = vld [vmem:[#allocation27_spill] sm:$0xff] }
 0x17d   : > { %3348 = vmatmul.msk.f32.gmra.mxu3 %vm249_vm1, %v3314_v20  ;;  %v3317_v20 = vld [vmem:[%s3653_s11 + $0x81] sm:$0xff] }
 0x17e   : > { %3414 = vmatmul.msk.f32.gmra.mxu0 %vm249_vm1, %v3918_v60 }
 0x17f   : > { %v885_v21 = vpop.f32.mrf.mxu2 }
 0x180   : > { %v941_v59 = vadd.f32 %v885_v21, %v640_v54  ;;  %v1164_v23 = vpop.f32.mrf.mxu3  ;;  %v642_v9 = vpop.f32.mrf.mxu1  ;;  %v4888_v54 = vld [vmem:[#allocation14_spill] sm:$0xff] }
 0x181   : > { %v643_v63 = vadd.f32 %v642_v9, %v4883_v48  ;;  %v4889_v21 = vld [vmem:[#allocation30_spill] sm:$0xff] }
 0x182   : > { %v1220_v34 = vadd.f32 %v1164_v23, %v941_v59 }
 0x183   : > { %v1445_v24 = vpop.f32.mrf.mxu0  ;;  %3217 = vmatmul.msk.f32.gmra.mxu1 %vm249_vm1, %v3902_v57  ;;  %v4884_v57 = vld [vmem:[#allocation6_spill] sm:$0xff] }
 0x184   : > { %v4372_v47 = vadd.f32 %v1442_v12, %v1220_v34  ;;  %3283 = vmatmul.msk.f32.gmra.mxu2 %vm249_vm1, %v4881_v55  ;;  %v3318_v55 = vld [vmem:[%s3653_s11 + $0x91] sm:$0xff] }
 0x185   : > { %3349 = vmatmul.msk.f32.gmra.mxu3 %vm249_vm1, %v3315_v35 }
 0x186   : > { %3415 = vmatmul.msk.f32.gmra.mxu0 %vm249_vm1, %v4882_v56 }
 0x187   : > { %v888_v1 = vpop.f32.mrf.mxu2 }
 0x188   : > { %v942_v26 = vadd.f32 %v888_v1, %v643_v63  ;;  %v1167_v7 = vpop.f32.mrf.mxu3  ;;  %v645_v31 = vpop.f32.mrf.mxu1  ;;  %v4891_v1 = vld [vmem:[#allocation17_spill] sm:$0xff] }
 0x189   : > { %v646_v36 = vadd.f32 %v645_v31, %v4886_v30  ;;  %v3319_v30 = vld [vmem:[%s3653_s11 + $0x99] sm:$0xff] }
 0x18a   : > { %v1221_v49 = vadd.f32 %v1167_v7, %v942_v26  ;;  %v4892_v26 = vld [vmem:[#allocation7_spill] sm:$0xff] }
 0x18b   : > { %v1448_v5 = vpop.f32.mrf.mxu0  ;;  %3218 = vmatmul.msk.f32.gmra.mxu1 %vm249_vm1, %v3918_v60  ;;  %v4887_v60 = vld [vmem:[#allocation9_spill] sm:$0xff] }
 0x18c   : > { %v4383_v15 = vadd.f32 %v1445_v24, %v1221_v49  ;;  %3284 = vmatmul.msk.f32.gmra.mxu2 %vm249_vm1, %v4884_v57 }
 0x18d   : > { %3350 = vmatmul.msk.f32.gmra.mxu3 %vm249_vm1, %v3316_v50 }
 0x18e   : > { %3416 = vmatmul.msk.f32.gmra.mxu0 %vm249_vm1, %v4885_v3 }
 0x18f   : > { %v891_v51 = vpop.f32.mrf.mxu2 }
 0x190   : > { %v943_v52 = vadd.f32 %v891_v51, %v646_v36  ;;  %v1170_v17 = vpop.f32.mrf.mxu3  ;;  %v648_v11 = vpop.f32.mrf.mxu1 }
 0x191   : > { %v649_v59 = vadd.f32 %v648_v11, %v4889_v21 }
 0x192   : > { %v1222_v39 = vadd.f32 %v1170_v17, %v943_v52  ;;  %v4894_v52 = vld [vmem:[#allocation21_spill] sm:$0xff]  ;;  %v4895_v17 = vld [vmem:[#allocation10_spill] sm:$0xff] }
 0x193   : > { %v1451_v12 = vpop.f32.mrf.mxu0  ;;  %3219 = vmatmul.msk.f32.gmra.mxu1 %vm249_vm1, %v4882_v56  ;;  %v4890_v56 = vld [vmem:[#allocation12_spill] sm:$0xff] }
 0x194   : > { %v4394_v40 = vadd.f32 %v1448_v5, %v1222_v39  ;;  %3285 = vmatmul.msk.f32.gmra.mxu2 %vm249_vm1, %v4887_v60 }
 0x195   : > { %3351 = vmatmul.msk.f32.gmra.mxu3 %vm249_vm1, %v3317_v20 }
 0x196   : > { %3417 = vmatmul.msk.f32.gmra.mxu0 %vm249_vm1, %v4888_v54 }
 0x197   : > { %v894_v23 = vpop.f32.mrf.mxu2 }
 0x198   : > { %v944_v9 = vadd.f32 %v894_v23, %v649_v59  ;;  %v1173_v34 = vpop.f32.mrf.mxu3  ;;  %v651_v35 = vpop.f32.mrf.mxu1  ;;  %v3320_v59 = vld [vmem:[%s3653_s11 + $0xa9] sm:$0xff] }
 0x199   : > { %v652_v7 = vadd.f32 %v651_v35, %v4892_v26  ;;  %v4898_v35 = vld [vmem:[#allocation13_spill] sm:$0xff] }
 0x19a   : > { %v1223_v24 = vadd.f32 %v1173_v34, %v944_v9  ;;  %v4897_v34 = vld [vmem:[#allocation25_spill] sm:$0xff] }
 0x19b   : > { %v1454_v48 = vpop.f32.mrf.mxu0  ;;  %3220 = vmatmul.msk.f32.gmra.mxu1 %vm249_vm1, %v4885_v3  ;;  %v4893_v3 = vld [vmem:[#allocation15_spill] sm:$0xff] }
 0x19c   : > { %v4405_v63 = vadd.f32 %v1451_v12, %v1223_v24  ;;  %3286 = vmatmul.msk.f32.gmra.mxu2 %vm249_vm1, %v4890_v56 }
 0x19d   : > { %3352 = vmatmul.msk.f32.gmra.mxu3 %vm249_vm1, %v3318_v55 }
 0x19e   : > { %3418 = vmatmul.msk.f32.gmra.mxu0 %vm249_vm1, %v4891_v1 }
 0x19f   : > { %v897_v31 = vpop.f32.mrf.mxu2 }
 0x1a0   : > { %v945_v49 = vadd.f32 %v897_v31, %v652_v7  ;;  %v1176_v50 = vpop.f32.mrf.mxu3  ;;  %v654_v5 = vpop.f32.mrf.mxu1  ;;  %v3321_v31 = vld [vmem:[%s3653_s11 + $0xb1] sm:$0xff] }
 0x1a1   : > { %v655_v11 = vadd.f32 %v654_v5, %v4895_v17  ;;  %v4900_v5 = vld [vmem:[#allocation29_spill] sm:$0xff] }
 0x1a2   : > { %v1224_v57 = vadd.f32 %v1176_v50, %v945_v49 }
 0x1a3   : > { %v1457_v36 = vpop.f32.mrf.mxu0  ;;  %3221 = vmatmul.msk.f32.gmra.mxu1 %vm249_vm1, %v4888_v54  ;;  %v4896_v54 = vld [vmem:[#allocation18_spill] sm:$0xff] }
 0x1a4   : > { %v4416_v51 = vadd.f32 %v1454_v48, %v1224_v57  ;;  %3287 = vmatmul.msk.f32.gmra.mxu2 %vm249_vm1, %v4893_v3  ;;  %v4901_v57 = vld [vmem:[#allocation16_spill] sm:$0xff] }
 0x1a5   : > { %3353 = vmatmul.msk.f32.gmra.mxu3 %vm249_vm1, %v3319_v30 }
 0x1a6   : > { %3419 = vmatmul.msk.f32.gmra.mxu0 %vm249_vm1, %v4894_v52 }
 0x1a7   : > { %v900_v39 = vpop.f32.mrf.mxu2 }
 0x1a8   : > { %v946_v20 = vadd.f32 %v900_v39, %v655_v11  ;;  %v1179_v12 = vpop.f32.mrf.mxu3  ;;  %v657_v60 = vpop.f32.mrf.mxu1 }
 0x1a9   : > { %v658_v24 = vadd.f32 %v657_v60, %v4898_v35 }
 0x1aa   : > { %v1225_v21 = vadd.f32 %v1179_v12, %v946_v20  ;;  %v3322_v20 = vld [vmem:[%s3653_s11 + $0xc1] sm:$0xff] }
 0x1ab   : > { %v1460_v23 = vpop.f32.mrf.mxu0  ;;  %3222 = vmatmul.msk.f32.gmra.mxu1 %vm249_vm1, %v4891_v1  ;;  %v4899_v1 = vld [vmem:[#allocation22_spill] sm:$0xff] }
 0x1ac   : > { %v4427_v9 = vadd.f32 %v1457_v36, %v1225_v21  ;;  %3288 = vmatmul.msk.f32.gmra.mxu2 %vm249_vm1, %v4896_v54  ;;  %v4903_v21 = vld [vmem:[#allocation32_spill] sm:$0xff] }
 0x1ad   : > { %3354 = vmatmul.msk.f32.gmra.mxu3 %vm249_vm1, %v3320_v59  ;;  %v4904_v59 = vld [vmem:[#allocation20_spill] sm:$0xff] }
 0x1ae   : > { %3420 = vmatmul.msk.f32.gmra.mxu0 %vm249_vm1, %v4897_v34 }
 0x1af   : > { %v903_v55 = vpop.f32.mrf.mxu2 }
 0x1b0   : > { %v947_v48 = vadd.f32 %v903_v55, %v658_v24  ;;  %v1182_v56 = vpop.f32.mrf.mxu3  ;;  %v660_v26 = vpop.f32.mrf.mxu1 }
 0x1b1   : > { %v661_v30 = vadd.f32 %v660_v26, %v4901_v57 }
 0x1b2   : > { %v1226_v7 = vadd.f32 %v1182_v56, %v947_v48  ;;  %v3323_v56 = vld [vmem:[%s3653_s11 + $0xc9] sm:$0xff] }
 0x1b3   : > { %v1463_v49 = vpop.f32.mrf.mxu0  ;;  %3223 = vmatmul.msk.f32.gmra.mxu1 %vm249_vm1, %v4894_v52  ;;  %v4902_v52 = vld [vmem:[#allocation26_spill] sm:$0xff] }
 0x1b4   : > { %v4438_v50 = vadd.f32 %v1460_v23, %v1226_v7  ;;  %3289 = vmatmul.msk.f32.gmra.mxu2 %vm249_vm1, %v4899_v1 }
 0x1b5   : > { %3355 = vmatmul.msk.f32.gmra.mxu3 %vm249_vm1, %v3321_v31 }
 0x1b6   : > { %3421 = vmatmul.msk.f32.gmra.mxu0 %vm249_vm1, %v4900_v5 }
 0x1b7   : > { %v906_v36 = vpop.f32.mrf.mxu2 }
 0x1b8   : > { %v948_v3 = vadd.f32 %v906_v36, %v661_v30  ;;  %v1185_v17 = vpop.f32.mrf.mxu3  ;;  %v663_v11 = vpop.f32.mrf.mxu1 }
 0x1b9   : > { %v664_v23 = vadd.f32 %v663_v11, %v4904_v59 }
 0x1ba   : > { %v1227_v39 = vadd.f32 %v1185_v17, %v948_v3  ;;  %v3324_v3 = vld [vmem:[%s3653_s11 + $0xd9] sm:$0xff] }
 0x1bb   : > { %v1466_v12 = vpop.f32.mrf.mxu0  ;;  %3224 = vmatmul.msk.f32.gmra.mxu1 %vm249_vm1, %v4897_v34  ;;  %v4905_v34 = vld [vmem:[#allocation24_spill] sm:$0xff] }
 0x1bc   : > { %v4449_v60 = vadd.f32 %v1463_v49, %v1227_v39  ;;  %3290 = vmatmul.msk.f32.gmra.mxu2 %vm249_vm1, %v4902_v52 }
 0x1bd   : > { %3356 = vmatmul.msk.f32.gmra.mxu3 %vm249_vm1, %v3322_v20 }
 0x1be   : > { %3422 = vmatmul.msk.f32.gmra.mxu0 %vm249_vm1, %v4903_v21 }
 0x1bf   : > { %v909_v54 = vpop.f32.mrf.mxu2 }
 0x1c0   : > { %v949_v35 = vadd.f32 %v909_v54, %v664_v23  ;;  %v1188_v24 = vpop.f32.mrf.mxu3  ;;  %v666_v55 = vpop.f32.mrf.mxu1  ;;  %v3325_v23 = vld [vmem:[%s3653_s11 + $0xe1] sm:$0xff] }
 0x1c1   : > { %v667_v31 = vadd.f32 %v666_v55, %v4905_v34  ;;  %v3326_v34 = vld [vmem:[%s3653_s11 + $0xf1] sm:$0xff] }
 0x1c2   : > { %v1228_v48 = vadd.f32 %v1188_v24, %v949_v35 }
 0x1c3   : > { %v1469_v26 = vpop.f32.mrf.mxu0  ;;  %3225 = vmatmul.msk.f32.gmra.mxu1 %vm249_vm1, %v4900_v5 }
 0x1c4   : > { %v4460_v7 = vadd.f32 %v1466_v12, %v1228_v48  ;;  %3291 = vmatmul.msk.f32.gmra.mxu2 %vm249_vm1, %v4075_v44  ;;  %v4906_v44 = vld [vmem:[#allocation28_spill] sm:$0xff] }
 0x1c5   : > { %3357 = vmatmul.msk.f32.gmra.mxu3 %vm249_vm1, %v3323_v56 }
 0x1c6   : > { %3423 = vmatmul.msk.f32.gmra.mxu0 %vm249_vm1, %v4107_v2 }
 0x1c7   : > { %v912_v49 = vpop.f32.mrf.mxu2 }
 0x1c8   : > { %v950_v1 = vadd.f32 %v912_v49, %v667_v31  ;;  %v1191_v57 = vpop.f32.mrf.mxu3  ;;  %v669_v30 = vpop.f32.mrf.mxu1 }
 0x1c9   : > { %v670_v5 = vadd.f32 %v669_v30, %v4906_v44 }
 0x1ca   : > { %v1229_v36 = vadd.f32 %v1191_v57, %v950_v1 }
 0x1cb   : > { %v1472_v17 = vpop.f32.mrf.mxu0  ;;  %3226 = vmatmul.msk.f32.gmra.mxu1 %vm249_vm1, %v4903_v21 }
 0x1cc   : > { %v4471_v11 = vadd.f32 %v1469_v26, %v1229_v36  ;;  %3292 = vmatmul.msk.f32.gmra.mxu2 %vm249_vm1, %v4095_v61  ;;  %v4907_v61 = vld [vmem:[#allocation31_spill] sm:$0xff] }
 0x1cd   : > { %3358 = vmatmul.msk.f32.gmra.mxu3 %vm249_vm1, %v3324_v3 }
 0x1ce   : > { %3424 = vmatmul.msk.f32.gmra.mxu0 %vm249_vm1, %v4124_v27 }
 0x1cf   : > { %v915_v39 = vpop.f32.mrf.mxu2 }
 0x1d0   : > { %v951_v20 = vadd.f32 %v915_v39, %v670_v5  ;;  %v1194_v12 = vpop.f32.mrf.mxu3  ;;  %v672_v52 = vpop.f32.mrf.mxu1 }
 0x1d1   : > { %v673_v21 = vadd.f32 %v672_v52, %v4907_v61 }
 0x1d2   : > { %v1230_v59 = vadd.f32 %v1194_v12, %v951_v20 }
 0x1d3   : > { %v1475_v54 = vpop.f32.mrf.mxu0  ;;  %3227 = vmatmul.msk.f32.gmra.mxu1 %vm249_vm1, %v4107_v2 }
 0x1d4   : > { %v4482_v35 = vadd.f32 %v1472_v17, %v1230_v59  ;;  %3293 = vmatmul.msk.f32.gmra.mxu2 %vm249_vm1, %v4110_v58  ;;  %v4908_v58 = vld [vmem:[#allocation33_spill] sm:$0xff]  ;;  %v3327_v17 = vld [vmem:[%s3653_s11 + $0xf9] sm:$0xff] }
 0x1d5   : > { %3359 = vmatmul.msk.f32.gmra.mxu3 %vm249_vm1, %v3325_v23  ;;  %v3328_v23 = vld [vmem:[%s3653_s11 + $0x109] sm:$0xff] }
 0x1d6   : > { %3425 = vmatmul.msk.f32.gmra.mxu0 %vm249_vm1, %v4141_v62 }
 0x1d7   : > { %v918_v24 = vpop.f32.mrf.mxu2 }
 0x1d8   : > { %v952_v55 = vadd.f32 %v918_v24, %v673_v21  ;;  %v1197_v48 = vpop.f32.mrf.mxu3  ;;  %v1660_v56 = vpop.f32.mrf.mxu1  ;;  %v4910_v21 = vld [vmem:[#allocation35_spill] sm:$0xff] }
 0x1d9   : > { %v1756_v49 = vadd.f32 %v1660_v56, %v4908_v58 }
 0x1da   : > { %v1231_v26 = vadd.f32 %v1197_v48, %v952_v55 }
 0x1db   : > { %v2495_v31 = vpop.f32.mrf.mxu0  ;;  %3228 = vmatmul.msk.f32.gmra.mxu1 %vm249_vm1, %v4124_v27 }
 0x1dc   : > { %v4493_v2 = vadd.f32 %v1475_v54, %v1231_v26  ;;  %3294 = vmatmul.msk.f32.gmra.mxu2 %vm249_vm1, %v4127_v6  ;;  %v4909_v6 = vld [vmem:[#allocation34_spill] sm:$0xff] }
 0x1dd   : > { %3360 = vmatmul.msk.f32.gmra.mxu3 %vm249_vm1, %v3326_v34 }
 0x1de   : > { %3426 = vmatmul.msk.f32.gmra.mxu0 %vm249_vm1, %v4158_v4 }
 0x1df   : > { %v1939_v1 = vpop.f32.mrf.mxu2 }
 0x1e0   : > { %v2035_v57 = vadd.f32 %v1939_v1, %v1756_v49  ;;  %v2217_v30 = vpop.f32.mrf.mxu3  ;;  %v1663_v36 = vpop.f32.mrf.mxu1 }
 0x1e1   : > { %v1757_v5 = vadd.f32 %v1663_v36, %v4909_v6 }
 0x1e2   : > { %v2313_v3 = vadd.f32 %v2217_v30, %v2035_v57  ;;  %v3329_v57 = vld [vmem:[%s3653_s11 + $0x111] sm:$0xff] }
 0x1e3   : > { %v2498_v44 = vpop.f32.mrf.mxu0  ;;  %3229 = vmatmul.msk.f32.gmra.mxu1 %vm249_vm1, %v4141_v62 }
 0x1e4   : > { %v2591_v27 = vadd.f32 %v2495_v31, %v2313_v3  ;;  %3295 = vmatmul.msk.f32.gmra.mxu2 %vm249_vm1, %v4144_v13  ;;  %v4911_v3 = vld [vmem:[#allocation36_spill] sm:$0xff] }
 0x1e5   : > { %3361 = vmatmul.msk.f32.gmra.mxu3 %vm249_vm1, %v3327_v17 }
 0x1e6   : > { %3427 = vmatmul.msk.f32.gmra.mxu0 %vm249_vm1, %v4175_v16  ;;  %2624 = vst.msk [vmem:[%s4508_s6] sm:$0xff] %vm2623_vm2, %v2591_v27  ;;  %v2727_v54 = vmul.f32 %v2591_v27, %v2591_v27  ;;  %v2656_v13 = vsel %vm2623_vm2, %v2591_v27, 0.0 }
 0x1e7   : > { %v1942_v39 = vpop.f32.mrf.mxu2 }
 0x1e8   : > { %v2036_v20 = vadd.f32 %v1942_v39, %v1757_v5  ;;  %v2220_v12 = vpop.f32.mrf.mxu3  ;;  %v1666_v52 = vpop.f32.mrf.mxu1 }
 0x1e9   : > { %v1758_v24 = vadd.f32 %v1666_v52, %v4910_v21 }
 0x1ea   : > { %v2314_v59 = vadd.f32 %v2220_v12, %v2036_v20 }
 0x1eb   : > { %v2501_v62 = vpop.f32.mrf.mxu0  ;;  %3230 = vmatmul.msk.f32.gmra.mxu1 %vm249_vm1, %v4158_v4 }
 0x1ec   : > { %v2592_v61 = vadd.f32 %v2498_v44, %v2314_v59  ;;  %3296 = vmatmul.msk.f32.gmra.mxu2 %vm249_vm1, %v4161_v14  ;;  %v2759_v14 = vsel %vm2623_vm2, %v2727_v54, 0.0  ;;  %v3330_v59 = vld [vmem:[%s3653_s11 + $0x121] sm:$0xff] }
 0x1ed   : > { %3362 = vmatmul.msk.f32.gmra.mxu3 %vm249_vm1, %v3328_v23  ;;  %v4912_v54 = vld [vmem:[#allocation37_spill] sm:$0xff] }
 0x1ee   : > { %3428 = vmatmul.msk.f32.gmra.mxu0 %vm249_vm1, %v4192_v32  ;;  %2625 = vst.msk [vmem:[%s4508_s6 + $0x8] sm:$0xff] %vm2623_vm2, %v2592_v61  ;;  %v2657_v55 = vsel %vm2623_vm2, %v2592_v61, 0.0  ;;  %v2728_v48 = vmul.f32 %v2592_v61, %v2592_v61 }
 0x1ef   : > { %v2658_v56 = vadd.f32 %v2657_v55, %v2656_v13  ;;  %v1945_v4 = vpop.f32.mrf.mxu2 }
 0x1f0   : > { %v2760_v26 = vsel %vm2623_vm2, %v2728_v48, 0.0  ;;  %v2037_v34 = vadd.f32 %v1945_v4, %v1758_v24  ;;  %v2223_v31 = vpop.f32.mrf.mxu3  ;;  %v1669_v49 = vpop.f32.mrf.mxu1 }
 0x1f1   : > { %v2761_v58 = vadd.f32 %v2760_v26, %v2759_v14  ;;  %v1759_v17 = vadd.f32 %v1669_v49, %v4911_v3  ;;  %v3331_v26 = vld [vmem:[%s3653_s11 + $0x129] sm:$0xff] }
 0x1f2   : > { %v2315_v1 = vadd.f32 %v2223_v31, %v2037_v34  ;;  %v4913_v31 = vld [vmem:[#allocation38_spill] sm:$0xff] }
 0x1f3   : > { %v2504_v30 = vpop.f32.mrf.mxu0  ;;  %3231 = vmatmul.msk.f32.gmra.mxu1 %vm249_vm1, %v4175_v16 }
 0x1f4   : > { %v2593_v36 = vadd.f32 %v2501_v62, %v2315_v1  ;;  %3297 = vmatmul.msk.f32.gmra.mxu2 %vm249_vm1, %v4178_v18 }
 0x1f5   : > { %3363 = vmatmul.msk.f32.gmra.mxu3 %vm249_vm1, %v3329_v57 }
 0x1f6   : > { %3429 = vmatmul.msk.f32.gmra.mxu0 %vm249_vm1, %v4209_v45  ;;  %2626 = vst.msk [vmem:[%s4508_s6 + $0x10] sm:$0xff] %vm2623_vm2, %v2593_v36  ;;  %v2659_v44 = vsel %vm2623_vm2, %v2593_v36, 0.0  ;;  %v2729_v27 = vmul.f32 %v2593_v36, %v2593_v36 }
 0x1f7   : > { %v2660_v6 = vadd.f32 %v2659_v44, %v2658_v56  ;;  %v1948_v5 = vpop.f32.mrf.mxu2  ;;  %v3200_v44 = vld [vmem:[%s3653_s11 + $0x122] sm:$0xff] }
 0x1f8   : > { %v2762_v16 = vsel %vm2623_vm2, %v2729_v27, 0.0  ;;  %v2038_v39 = vadd.f32 %v1948_v5, %v1759_v17  ;;  %v2226_v20 = vpop.f32.mrf.mxu3  ;;  %v1672_v12 = vpop.f32.mrf.mxu1  ;;  %v3266_v27 = vld [vmem:[%s3653_s11 + $0x138] sm:$0xff] }
 0x1f9   : > { %v2763_v18 = vadd.f32 %v2762_v16, %v2761_v58  ;;  %v1760_v61 = vadd.f32 %v1672_v12, %v4912_v54 }
 0x1fa   : > { %v2316_v52 = vadd.f32 %v2226_v20, %v2038_v39  ;;  %v4914_v39 = vld [vmem:[#allocation39_spill] sm:$0xff] }
 0x1fb   : > { %v2507_v23 = vpop.f32.mrf.mxu0  ;;  %3232 = vmatmul.msk.f32.gmra.mxu1 %vm249_vm1, %v4192_v32 }
 0x1fc   : > { %v2594_v62 = vadd.f32 %v2504_v30, %v2316_v52  ;;  %3298 = vmatmul.msk.f32.gmra.mxu2 %vm249_vm1, %v4195_v22 }
 0x1fd   : > { %3364 = vmatmul.msk.f32.gmra.mxu3 %vm249_vm1, %v3330_v59 }
 0x1fe   : > { %3430 = vmatmul.msk.f32.gmra.mxu0 %vm249_vm1, %v4226_v0  ;;  %2627 = vst.msk [vmem:[%s4508_s6 + $0x18] sm:$0xff] %vm2623_vm2, %v2594_v62  ;;  %v2661_v13 = vsel %vm2623_vm2, %v2594_v62, 0.0  ;;  %v2730_v21 = vmul.f32 %v2594_v62, %v2594_v62 }
 0x1ff   : > { %v2662_v24 = vadd.f32 %v2661_v13, %v2660_v6  ;;  %v1951_v55 = vpop.f32.mrf.mxu2 }
 0x200   : > { %v2764_v32 = vsel %vm2623_vm2, %v2730_v21, 0.0  ;;  %v2039_v48 = vadd.f32 %v1951_v55, %v1760_v61  ;;  %v2229_v56 = vpop.f32.mrf.mxu3  ;;  %v1675_v4 = vpop.f32.mrf.mxu1  ;;  %v3201_v21 = vld [vmem:[%s3653_s11 + $0x12a] sm:$0xff]  ;;  %v3333_v55 = vld [vmem:[%s3653_s11 + $0x141] sm:$0xff] }
 0x201   : > { %v2765_v22 = vadd.f32 %v2764_v32, %v2763_v18  ;;  %v1761_v58 = vadd.f32 %v1675_v4, %v4913_v31 }
 0x202   : > { %v2317_v14 = vadd.f32 %v2229_v56, %v2039_v48  ;;  %v3399_v48 = vld [vmem:[%s3653_s11 + $0x142] sm:$0xff] }
 0x203   : > { %v2510_v34 = vpop.f32.mrf.mxu0  ;;  %3233 = vmatmul.msk.f32.gmra.mxu1 %vm249_vm1, %v4209_v45 }
 0x204   : > { %v2595_v0 = vadd.f32 %v2507_v23, %v2317_v14  ;;  %3299 = vmatmul.msk.f32.gmra.mxu2 %vm249_vm1, %v4212_v29 }
 0x205   : > { %3365 = vmatmul.msk.f32.gmra.mxu3 %vm249_vm1, %v3331_v26 }
 0x206   : > { %3431 = vmatmul.msk.f32.gmra.mxu0 %vm249_vm1, %v4240_v37  ;;  %2628 = vst.msk [vmem:[%s4508_s6 + $0x20] sm:$0xff] %vm2623_vm2, %v2595_v0  ;;  %v2663_v49 = vsel %vm2623_vm2, %v2595_v0, 0.0  ;;  %v2731_v1 = vmul.f32 %v2595_v0, %v2595_v0  ;;  %v3332_v37 = vld [vmem:[%s3653_s11 + $0x139] sm:$0xff] }
 0x207   : > { %v2664_v57 = vadd.f32 %v2663_v49, %v2662_v24  ;;  %v1954_v30 = vpop.f32.mrf.mxu2  ;;  %v3267_v24 = vld [vmem:[%s3653_s11 + $0x140] sm:$0xff] }
 0x208   : > { %v2766_v45 = vsel %vm2623_vm2, %v2731_v1, 0.0  ;;  %v2040_v36 = vadd.f32 %v1954_v30, %v1761_v58  ;;  %v2232_v29 = vpop.f32.mrf.mxu3  ;;  %v1678_v17 = vpop.f32.mrf.mxu1  ;;  %v3202_v30 = vld [vmem:[%s3653_s11 + $0x13a] sm:$0xff] }
 0x209   : > { %v2767_v3 = vadd.f32 %v2766_v45, %v2765_v22  ;;  %v1762_v20 = vadd.f32 %v1678_v17, %v4914_v39  ;;  %v4915_v22 = vld [vmem:[#allocation40_spill] sm:$0xff]  ;;  %v3268_v45 = vld [vmem:[%s3653_s11 + $0x150] sm:$0xff] }
 0x20a   : > { %v2318_v6 = vadd.f32 %v2232_v29, %v2040_v36  ;;  %v3334_v29 = vld [vmem:[%s3653_s11 + $0x151] sm:$0xff] }
 0x20b   : > { %v2513_v5 = vpop.f32.mrf.mxu0  ;;  %3234 = vmatmul.msk.f32.gmra.mxu1 %vm249_vm1, %v3200_v44  ;;  %v3400_v17 = vld [vmem:[%s3653_s11 + $0x152] sm:$0xff] }
 0x20c   : > { %v2596_v16 = vadd.f32 %v2510_v34, %v2318_v6  ;;  %3300 = vmatmul.msk.f32.gmra.mxu2 %vm249_vm1, %v3266_v27  ;;  %v4916_v27 = vld [vmem:[#allocation41_spill] sm:$0xff] }
 0x20d   : > { %3366 = vmatmul.msk.f32.gmra.mxu3 %vm249_vm1, %v3332_v37 }
 0x20e   : > { %3432 = vmatmul.msk.f32.gmra.mxu0 %vm249_vm1, %v4254_v10  ;;  %2629 = vst.msk [vmem:[%s4508_s6 + $0x28] sm:$0xff] %vm2623_vm2, %v2596_v16  ;;  %v2665_v18 = vsel %vm2623_vm2, %v2596_v16, 0.0  ;;  %v2732_v12 = vmul.f32 %v2596_v16, %v2596_v16 }
 0x20f   : > { %v2666_v52 = vadd.f32 %v2665_v18, %v2664_v57  ;;  %v1957_v59 = vpop.f32.mrf.mxu2 }
 0x210   : > { %v2768_v23 = vsel %vm2623_vm2, %v2732_v12, 0.0  ;;  %v2041_v62 = vadd.f32 %v1957_v59, %v1762_v20  ;;  %v2235_v54 = vpop.f32.mrf.mxu3  ;;  %v1681_v13 = vpop.f32.mrf.mxu1 }
 0x211   : > { %v2769_v61 = vadd.f32 %v2768_v23, %v2767_v3  ;;  %v1763_v4 = vadd.f32 %v1681_v13, %v4915_v22  ;;  %v3269_v23 = vld [vmem:[%s3653_s11 + $0x158] sm:$0xff] }
 0x212   : > { %v2319_v10 = vadd.f32 %v2235_v54, %v2041_v62  ;;  %v3335_v54 = vld [vmem:[%s3653_s11 + $0x159] sm:$0xff] }
 0x213   : > { %v2516_v32 = vpop.f32.mrf.mxu0  ;;  %3235 = vmatmul.msk.f32.gmra.mxu1 %vm249_vm1, %v3201_v21  ;;  %v3401_v13 = vld [vmem:[%s3653_s11 + $0x15a] sm:$0xff] }
 0x214   : > { %v2597_v56 = vadd.f32 %v2513_v5, %v2319_v10  ;;  %3301 = vmatmul.msk.f32.gmra.mxu2 %vm249_vm1, %v3267_v24 }
 0x215   : > { %3367 = vmatmul.msk.f32.gmra.mxu3 %vm249_vm1, %v3333_v55 }
 0x216   : > { %3433 = vmatmul.msk.f32.gmra.mxu0 %vm249_vm1, %v3399_v48  ;;  %2630 = vst.msk [vmem:[%s4508_s6 + $0x30] sm:$0xff] %vm2623_vm2, %v2597_v56  ;;  %v2667_v14 = vsel %vm2623_vm2, %v2597_v56, 0.0  ;;  %v2733_v26 = vmul.f32 %v2597_v56, %v2597_v56 }
 0x217   : > { %v2668_v34 = vadd.f32 %v2667_v14, %v2666_v52  ;;  %v1960_v0 = vpop.f32.mrf.mxu2 }
 0x218   : > { %v2770_v31 = vsel %vm2623_vm2, %v2733_v26, 0.0  ;;  %v2042_v58 = vadd.f32 %v1960_v0, %v1763_v4  ;;  %v2238_v49 = vpop.f32.mrf.mxu3  ;;  %v1684_v57 = vpop.f32.mrf.mxu1 }
 0x219   : > { %v2771_v1 = vadd.f32 %v2770_v31, %v2769_v61  ;;  %v1764_v6 = vadd.f32 %v1684_v57, %v4916_v27  ;;  %v3336_v31 = vld [vmem:[%s3653_s11 + $0x169] sm:$0xff] }
 0x21a   : > { %v2320_v36 = vadd.f32 %v2238_v49, %v2042_v58  ;;  %v3402_v49 = vld [vmem:[%s3653_s11 + $0x16a] sm:$0xff] }
 0x21b   : > { %v2519_v3 = vpop.f32.mrf.mxu0  ;;  %3236 = vmatmul.msk.f32.gmra.mxu1 %vm249_vm1, %v3202_v30 }
 0x21c   : > { %v2598_v44 = vadd.f32 %v2516_v32, %v2320_v36  ;;  %3302 = vmatmul.msk.f32.gmra.mxu2 %vm249_vm1, %v3268_v45 }
 0x21d   : > { %3368 = vmatmul.msk.f32.gmra.mxu3 %vm249_vm1, %v3334_v29 }
 0x21e   : > { %3434 = vmatmul.msk.f32.gmra.mxu0 %vm249_vm1, %v3400_v17  ;;  %2631 = vst.msk [vmem:[%s4508_s6 + $0x38] sm:$0xff] %vm2623_vm2, %v2598_v44  ;;  %v2669_v37 = vsel %vm2623_vm2, %v2598_v44, 0.0  ;;  %v2734_v5 = vmul.f32 %v2598_v44, %v2598_v44 }
 0x21f   : > { %v2670_v16 = vadd.f32 %v2669_v37, %v2668_v34  ;;  %v1963_v39 = vpop.f32.mrf.mxu2  ;;  %v3270_v34 = vld [vmem:[%s3653_s11 + $0x168] sm:$0xff] }
 0x220   : > { %v2772_v20 = vsel %vm2623_vm2, %v2734_v5, 0.0  ;;  %v2043_v18 = vadd.f32 %v1963_v39, %v1764_v6  ;;  %v2241_v12 = vpop.f32.mrf.mxu3  ;;  %v1687_v59 = vpop.f32.mrf.mxu1  ;;  %v3271_v6 = vld [vmem:[%s3653_s11 + $0x170] sm:$0xff] }
 0x221   : > { %v2773_v52 = vadd.f32 %v2772_v20, %v2771_v1  ;;  %v1765_v24 = vadd.f32 %v1687_v59, %v4257_v28  ;;  %v3337_v5 = vld [vmem:[%s3653_s11 + $0x171] sm:$0xff] }
 0x222   : > { %v2321_v62 = vadd.f32 %v2241_v12, %v2043_v18  ;;  %v3403_v39 = vld [vmem:[%s3653_s11 + $0x172] sm:$0xff] }
 0x223   : > { %v2522_v61 = vpop.f32.mrf.mxu0  ;;  %3237 = vmatmul.msk.f32.gmra.mxu1 %vm249_vm1, %v3399_v48 }
 0x224   : > { %v2599_v21 = vadd.f32 %v2519_v3, %v2321_v62  ;;  %3303 = vmatmul.msk.f32.gmra.mxu2 %vm249_vm1, %v3269_v23 }
 0x225   : > { %3369 = vmatmul.msk.f32.gmra.mxu3 %vm249_vm1, %v3335_v54 }
 0x226   : > { %3435 = vmatmul.msk.f32.gmra.mxu0 %vm249_vm1, %v3401_v13  ;;  %2632 = vst.msk [vmem:[%s4508_s6 + $0x40] sm:$0xff] %vm2623_vm2, %v2599_v21  ;;  %v2671_v10 = vsel %vm2623_vm2, %v2599_v21, 0.0  ;;  %v2735_v55 = vmul.f32 %v2599_v21, %v2599_v21  ;;  %v3272_v21 = vld [vmem:[%s3653_s11 + $0x180] sm:$0xff] }
 0x227   : > { %v2672_v32 = vadd.f32 %v2671_v10, %v2670_v16  ;;  %v1966_v56 = vpop.f32.mrf.mxu2  ;;  %v3338_v10 = vld [vmem:[%s3653_s11 + $0x181] sm:$0xff] }
 0x228   : > { %v2774_v22 = vsel %vm2623_vm2, %v2735_v55, 0.0  ;;  %v2044_v48 = vadd.f32 %v1966_v56, %v1765_v24  ;;  %v2244_v4 = vpop.f32.mrf.mxu3  ;;  %v1690_v26 = vpop.f32.mrf.mxu1 }
 0x229   : > { %v2775_v14 = vadd.f32 %v2774_v22, %v2773_v52  ;;  %v1766_v1 = vadd.f32 %v1690_v26, %v4268_v33 }
 0x22a   : > { %v2322_v0 = vadd.f32 %v2244_v4, %v2044_v48 }
 0x22b   : > { %v2525_v58 = vpop.f32.mrf.mxu0  ;;  %3238 = vmatmul.msk.f32.gmra.mxu1 %vm249_vm1, %v3400_v17 }
 0x22c   : > { %v2600_v28 = vadd.f32 %v2522_v61, %v2322_v0  ;;  %3304 = vmatmul.msk.f32.gmra.mxu2 %vm249_vm1, %v3270_v34 }
 0x22d   : > { %3370 = vmatmul.msk.f32.gmra.mxu3 %vm249_vm1, %v3336_v31 }
 0x22e   : > { %3436 = vmatmul.msk.f32.gmra.mxu0 %vm249_vm1, %v3402_v49  ;;  %2633 = vst.msk [vmem:[%s4508_s6 + $0x48] sm:$0xff] %vm2623_vm2, %v2600_v28  ;;  %v2673_v57 = vsel %vm2623_vm2, %v2600_v28, 0.0  ;;  %v2736_v30 = vmul.f32 %v2600_v28, %v2600_v28 }
 0x22f   : > { %v2674_v45 = vadd.f32 %v2673_v57, %v2672_v32  ;;  %v1969_v36 = vpop.f32.mrf.mxu2  ;;  %v3404_v32 = vld [vmem:[%s3653_s11 + $0x182] sm:$0xff] }
 0x230   : > { %v2776_v29 = vsel %vm2623_vm2, %v2736_v30, 0.0  ;;  %v2045_v3 = vadd.f32 %v1969_v36, %v1766_v1  ;;  %v2247_v17 = vpop.f32.mrf.mxu3  ;;  %v1693_v27 = vpop.f32.mrf.mxu1  ;;  %v3339_v1 = vld [vmem:[%s3653_s11 + $0x189] sm:$0xff] }
 0x231   : > { %v2777_v44 = vadd.f32 %v2776_v29, %v2775_v14  ;;  %v1767_v20 = vadd.f32 %v1693_v27, %v4278_v38  ;;  %v3405_v30 = vld [vmem:[%s3653_s11 + $0x18a] sm:$0xff] }
 0x232   : > { %v2323_v37 = vadd.f32 %v2247_v17, %v2045_v3 }
 0x233   : > { %v2528_v16 = vpop.f32.mrf.mxu0  ;;  %3239 = vmatmul.msk.f32.gmra.mxu1 %vm249_vm1, %v3401_v13 }
 0x234   : > { %v2601_v33 = vadd.f32 %v2525_v58, %v2323_v37  ;;  %3305 = vmatmul.msk.f32.gmra.mxu2 %vm249_vm1, %v3271_v6 }
 0x235   : > { %3371 = vmatmul.msk.f32.gmra.mxu3 %vm249_vm1, %v3337_v5 }
 0x236   : > { %3437 = vmatmul.msk.f32.gmra.mxu0 %vm249_vm1, %v3403_v39  ;;  %2634 = vst.msk [vmem:[%s4508_s6 + $0x50] sm:$0xff] %vm2623_vm2, %v2601_v33  ;;  %v2675_v18 = vsel %vm2623_vm2, %v2601_v33, 0.0  ;;  %v2737_v12 = vmul.f32 %v2601_v33, %v2601_v33  ;;  %v3340_v33 = vld [vmem:[%s3653_s11 + $0x199] sm:$0xff] }
 0x237   : > { %v2676_v52 = vadd.f32 %v2675_v18, %v2674_v45  ;;  %v1972_v59 = vpop.f32.mrf.mxu2  ;;  %v3406_v18 = vld [vmem:[%s3653_s11 + $0x19a] sm:$0xff] }
 0x238   : > { %v2778_v23 = vsel %vm2623_vm2, %v2737_v12, 0.0  ;;  %v2046_v62 = vadd.f32 %v1972_v59, %v1767_v20  ;;  %v2250_v54 = vpop.f32.mrf.mxu3  ;;  %v1696_v13 = vpop.f32.mrf.mxu1 }
 0x239   : > { %v2779_v61 = vadd.f32 %v2778_v23, %v2777_v44  ;;  %v1768_v56 = vadd.f32 %v1696_v13, %v4288_v19 }
 0x23a   : > { %v2324_v24 = vadd.f32 %v2250_v54, %v2046_v62 }
 0x23b   : > { %v2531_v55 = vpop.f32.mrf.mxu0  ;;  %3240 = vmatmul.msk.f32.gmra.mxu1 %vm249_vm1, %v3402_v49  ;;  %v3273_v49 = vld [vmem:[%s3653_s11 + $0x188] sm:$0xff] }
 0x23c   : > { %v2602_v38 = vadd.f32 %v2528_v16, %v2324_v24  ;;  %3306 = vmatmul.msk.f32.gmra.mxu2 %vm249_vm1, %v3272_v21  ;;  %v3274_v16 = vld [vmem:[%s3653_s11 + $0x198] sm:$0xff] }
 0x23d   : > { %3372 = vmatmul.msk.f32.gmra.mxu3 %vm249_vm1, %v3338_v10  ;;  %v3275_v10 = vld [vmem:[%s3653_s11 + $0x1a0] sm:$0xff] }
 0x23e   : > { %3438 = vmatmul.msk.f32.gmra.mxu0 %vm249_vm1, %v3404_v32  ;;  %2635 = vst.msk [vmem:[%s4508_s6 + $0x58] sm:$0xff] %vm2623_vm2, %v2602_v38  ;;  %v2677_v22 = vsel %vm2623_vm2, %v2602_v38, 0.0  ;;  %v2738_v48 = vmul.f32 %v2602_v38, %v2602_v38 }
 0x23f   : > { %v2678_v4 = vadd.f32 %v2677_v22, %v2676_v52  ;;  %v1975_v14 = vpop.f32.mrf.mxu2 }
 0x240   : > { %v2780_v26 = vsel %vm2623_vm2, %v2738_v48, 0.0  ;;  %v2047_v34 = vadd.f32 %v1975_v14, %v1768_v56  ;;  %v2253_v0 = vpop.f32.mrf.mxu3  ;;  %v1699_v58 = vpop.f32.mrf.mxu1  ;;  %v3407_v56 = vld [vmem:[%s3653_s11 + $0x1a2] sm:$0xff] }
 0x241   : > { %v2781_v31 = vadd.f32 %v2780_v26, %v2779_v61  ;;  %v1769_v45 = vadd.f32 %v1699_v58, %v4299_v8 }
 0x242   : > { %v2325_v28 = vadd.f32 %v2253_v0, %v2047_v34 }
 0x243   : > { %v2534_v57 = vpop.f32.mrf.mxu0  ;;  %3241 = vmatmul.msk.f32.gmra.mxu1 %vm249_vm1, %v3403_v39 }
 0x244   : > { %v2603_v19 = vadd.f32 %v2531_v55, %v2325_v28  ;;  %3307 = vmatmul.msk.f32.gmra.mxu2 %vm249_vm1, %v3273_v49 }
 0x245   : > { %3373 = vmatmul.msk.f32.gmra.mxu3 %vm249_vm1, %v3339_v1 }
 0x246   : > { %3439 = vmatmul.msk.f32.gmra.mxu0 %vm249_vm1, %v3405_v30  ;;  %2636 = vst.msk [vmem:[%s4508_s6 + $0x60] sm:$0xff] %vm2623_vm2, %v2603_v19  ;;  %v2679_v36 = vsel %vm2623_vm2, %v2603_v19, 0.0  ;;  %v2739_v29 = vmul.f32 %v2603_v19, %v2603_v19 }
 0x247   : > { %v2680_v3 = vadd.f32 %v2679_v36, %v2678_v4  ;;  %v1978_v17 = vpop.f32.mrf.mxu2 }
 0x248   : > { %v2782_v44 = vsel %vm2623_vm2, %v2739_v29, 0.0  ;;  %v2048_v27 = vadd.f32 %v1978_v17, %v1769_v45  ;;  %v2256_v6 = vpop.f32.mrf.mxu3  ;;  %v1702_v5 = vpop.f32.mrf.mxu1 }
 0x249   : > { %v2783_v37 = vadd.f32 %v2782_v44, %v2781_v31  ;;  %v1770_v12 = vadd.f32 %v1702_v5, %v4309_v25 }
 0x24a   : > { %v2326_v39 = vadd.f32 %v2256_v6, %v2048_v27 }
 0x24b   : > { %v2537_v20 = vpop.f32.mrf.mxu0  ;;  %3242 = vmatmul.msk.f32.gmra.mxu1 %vm249_vm1, %v3404_v32  ;;  %v3341_v32 = vld [vmem:[%s3653_s11 + $0x1a1] sm:$0xff]  ;;  %s2848_s11 = scalar_lea.hbm %s4816_s3, %s3443_s8 }
 0x24c   : > { %v2604_v8 = vadd.f32 %v2534_v57, %v2326_v39  ;;  %3308 = vmatmul.msk.f32.gmra.mxu2 %vm249_vm1, %v3274_v16  ;;  %s2852_s20 = sshll.u32 %s2848_s11, 4  ;;  %s2853_s20 = int_to_ptr.hbm [resolvable:$true] %s2852_s20 }
 0x24d   : > { %3374 = vmatmul.msk.f32.gmra.mxu3 %vm249_vm1, %v3340_v33  ;;  %s3504_s24 = sshra.s32 %s2853_s20, 4  ;;  %s3505_s24 = int_to_ptr.hbm [resolvable:$true] %s3504_s24 }
 0x24e   : > { %3440 = vmatmul.msk.f32.gmra.mxu0 %vm249_vm1, %v3406_v18  ;;  %2637 = vst.msk [vmem:[%s4508_s6 + $0x68] sm:$0xff] %vm2623_vm2, %v2604_v8  ;;  %v2681_v52 = vsel %vm2623_vm2, %v2604_v8, 0.0  ;;  %v2740_v59 = vmul.f32 %v2604_v8, %v2604_v8  ;;  %s3506_s25 = scalar_lea.hbm %s3505_s24, 2  ;;  %p3511_p0 = scmp.lt.s32.totalorder %s3505_s24, %s4816_s3 }
 0x24f   : > { %v2682_v23 = vadd.f32 %v2681_v52, %v2680_v3  ;;  %v1981_v62 = vpop.f32.mrf.mxu2  ;;  %p3507_p11 = scmp.ne.s32.totalorder %s3505_s24, %s3506_s25  ;;  %p3512_p1 = scmp.lt.s32.totalorder %s3510_s28, %s3506_s25 }
 0x250   : > { %v2784_v54 = vsel %vm2623_vm2, %v2740_v59, 0.0  ;;  %v2049_v61 = vadd.f32 %v1981_v62, %v1770_v12  ;;  %v2259_v13 = vpop.f32.mrf.mxu3  ;;  %v1705_v24 = vpop.f32.mrf.mxu1 }
 0x251   : > { %v2785_v21 = vadd.f32 %v2784_v54, %v2783_v37  ;;  %v1771_v22 = vadd.f32 %v1705_v24, %v4316_v41  ;;  %p3508_p12 = pnand %p3507_p11, %p3612_p5  ;;  %p3513_p2 = por %p3512_p1, %p3511_p0 }
 0x252   : > { %v2327_v55 = vadd.f32 %v2259_v13, %v2049_v61 }
 0x253   : > { %v2540_v38 = vpop.f32.mrf.mxu0  ;;  %3243 = vmatmul.msk.f32.gmra.mxu1 %vm249_vm1, %v3405_v30  ;;  %p3509_p13 = pneg %p3508_p12 }
 0x254   : > { %v2605_v25 = vadd.f32 %v2537_v20, %v2327_v55  ;;  %3309 = vmatmul.msk.f32.gmra.mxu2 %vm249_vm1, %v3275_v10 }
 0x255   : > { %3375 = vmatmul.msk.f32.gmra.mxu3 %vm249_vm1, %v3341_v32  ;;  %p3514_p3 = pnand %p3513_p2, %p3509_p13 }
 0x256   : > { %3441 = vmatmul.msk.f32.gmra.mxu0 %vm249_vm1, %v3407_v56  ;;  %2638 = vst.msk [vmem:[%s4508_s6 + $0x70] sm:$0xff] %vm2623_vm2, %v2605_v25  ;;  %v2683_v48 = vsel %vm2623_vm2, %v2605_v25, 0.0  ;;  %v2741_v4 = vmul.f32 %v2605_v25, %v2605_v25 }
 0x257   : > { %v2684_v14 = vadd.f32 %v2683_v48, %v2682_v23  ;;  %v1984_v26 = vpop.f32.mrf.mxu2 }
 0x258   : > { %v2786_v34 = vsel %vm2623_vm2, %v2741_v4, 0.0  ;;  %v2050_v0 = vadd.f32 %v1984_v26, %v1771_v22  ;;  %v2262_v31 = vpop.f32.mrf.mxu3  ;;  %v1708_v49 = vpop.f32.mrf.mxu1 }
 0x259   : > { %v2787_v58 = vadd.f32 %v2786_v34, %v2785_v21  ;;  %v1772_v30 = vadd.f32 %v1708_v49, %v4327_v42 }
 0x25a   : > { %v2328_v28 = vadd.f32 %v2262_v31, %v2050_v0 }
 0x25b   : > { %v2543_v1 = vpop.f32.mrf.mxu0 }
 0x25c   : > { %v2606_v57 = vadd.f32 %v2540_v38, %v2328_v28 }
 0x25e   : > { %2639 = vst.msk [vmem:[%s4508_s6 + $0x78] sm:$0xff] %vm2623_vm2, %v2606_v57  ;;  %v2685_v41 = vsel %vm2623_vm2, %v2606_v57, 0.0  ;;  %v2742_v19 = vmul.f32 %v2606_v57, %v2606_v57 }
 0x25f   : > { %v2686_v45 = vadd.f32 %v2685_v41, %v2684_v14  ;;  %v1987_v36 = vpop.f32.mrf.mxu2 }
 0x260   : > { %v2788_v29 = vsel %vm2623_vm2, %v2742_v19, 0.0  ;;  %v2051_v3 = vadd.f32 %v1987_v36, %v1772_v30  ;;  %v2265_v17 = vpop.f32.mrf.mxu3  ;;  %v1711_v27 = vpop.f32.mrf.mxu1 }
 0x261   : > { %v2789_v44 = vadd.f32 %v2788_v29, %v2787_v58  ;;  %v1773_v16 = vadd.f32 %v1711_v27, %v4338_v43 }
 0x262   : > { %v2329_v6 = vadd.f32 %v2265_v17, %v2051_v3 }
 0x263   : > { %v2546_v37 = vpop.f32.mrf.mxu0 }
 0x264   : > { %v2607_v5 = vadd.f32 %v2543_v1, %v2329_v6 }
 0x266   : > { %2640 = vst.msk [vmem:[%s4508_s6 + $0x80] sm:$0xff] %vm2623_vm2, %v2607_v5  ;;  %v2687_v42 = vsel %vm2623_vm2, %v2607_v5, 0.0  ;;  %v2743_v39 = vmul.f32 %v2607_v5, %v2607_v5 }
 0x267   : > { %v2688_v33 = vadd.f32 %v2687_v42, %v2686_v45  ;;  %v1990_v20 = vpop.f32.mrf.mxu2 }
 0x268   : > { %v2790_v18 = vsel %vm2623_vm2, %v2743_v39, 0.0  ;;  %v2052_v8 = vadd.f32 %v1990_v20, %v1773_v16  ;;  %v2268_v12 = vpop.f32.mrf.mxu3  ;;  %v1714_v59 = vpop.f32.mrf.mxu1 }
 0x269   : > { %v2791_v52 = vadd.f32 %v2790_v18, %v2789_v44  ;;  %v1774_v61 = vadd.f32 %v1714_v59, %v4349_v46 }
 0x26a   : > { %v2330_v23 = vadd.f32 %v2268_v12, %v2052_v8 }
 0x26b   : > { %v2549_v62 = vpop.f32.mrf.mxu0 }
 0x26c   : > { %v2608_v54 = vadd.f32 %v2546_v37, %v2330_v23 }
 0x26e   : > { %2641 = vst.msk [vmem:[%s4508_s6 + $0x88] sm:$0xff] %vm2623_vm2, %v2608_v54  ;;  %v2689_v43 = vsel %vm2623_vm2, %v2608_v54, 0.0  ;;  %v2744_v13 = vmul.f32 %v2608_v54, %v2608_v54 }
 0x26f   : > { %v2690_v21 = vadd.f32 %v2689_v43, %v2688_v33  ;;  %v1993_v24 = vpop.f32.mrf.mxu2 }
 0x270   : > { %v2792_v10 = vsel %vm2623_vm2, %v2744_v13, 0.0  ;;  %v2053_v55 = vadd.f32 %v1993_v24, %v1774_v61  ;;  %v2271_v32 = vpop.f32.mrf.mxu3  ;;  %v1717_v56 = vpop.f32.mrf.mxu1 }
 0x271   : > { %v2793_v38 = vadd.f32 %v2792_v10, %v2791_v52  ;;  %v1775_v4 = vadd.f32 %v1717_v56, %v4361_v53 }
 0x272   : > { %v2331_v25 = vadd.f32 %v2271_v32, %v2053_v55 }
 0x273   : > { %v2552_v22 = vpop.f32.mrf.mxu0 }
 0x274   : > { %v2609_v48 = vadd.f32 %v2549_v62, %v2331_v25 }
 0x276   : > { %2642 = vst.msk [vmem:[%s4508_s6 + $0x90] sm:$0xff] %vm2623_vm2, %v2609_v48  ;;  %v2691_v46 = vsel %vm2623_vm2, %v2609_v48, 0.0  ;;  %v2745_v14 = vmul.f32 %v2609_v48, %v2609_v48 }
 0x277   : > { %v2692_v26 = vadd.f32 %v2691_v46, %v2690_v21  ;;  %v1996_v34 = vpop.f32.mrf.mxu2 }
 0x278   : > { %v2794_v0 = vsel %vm2623_vm2, %v2745_v14, 0.0  ;;  %v2054_v31 = vadd.f32 %v1996_v34, %v1775_v4  ;;  %v2274_v58 = vpop.f32.mrf.mxu3  ;;  %v1720_v28 = vpop.f32.mrf.mxu1 }
 0x279   : > { %v2795_v49 = vadd.f32 %v2794_v0, %v2793_v38  ;;  %v1776_v41 = vadd.f32 %v1720_v28, %v4372_v47 }
 0x27a   : > { %v2332_v1 = vadd.f32 %v2274_v58, %v2054_v31 }
 0x27b   : > { %v2555_v57 = vpop.f32.mrf.mxu0 }
 0x27c   : > { %v2610_v30 = vadd.f32 %v2552_v22, %v2332_v1 }
 0x27e   : > { %2643 = vst.msk [vmem:[%s4508_s6 + $0x98] sm:$0xff] %vm2623_vm2, %v2610_v30  ;;  %v2693_v53 = vsel %vm2623_vm2, %v2610_v30, 0.0  ;;  %v2746_v19 = vmul.f32 %v2610_v30, %v2610_v30 }
 0x27f   : > { %v2694_v45 = vadd.f32 %v2693_v53, %v2692_v26  ;;  %v1999_v36 = vpop.f32.mrf.mxu2 }
 0x280   : > { %v2796_v29 = vsel %vm2623_vm2, %v2746_v19, 0.0  ;;  %v2055_v3 = vadd.f32 %v1999_v36, %v1776_v41  ;;  %v2277_v17 = vpop.f32.mrf.mxu3  ;;  %v1723_v27 = vpop.f32.mrf.mxu1 }
 0x281   : > { %v2797_v44 = vadd.f32 %v2796_v29, %v2795_v49  ;;  %v1777_v16 = vadd.f32 %v1723_v27, %v4383_v15 }
 0x282   : > { %v2333_v6 = vadd.f32 %v2277_v17, %v2055_v3 }
 0x283   : > { %v2558_v37 = vpop.f32.mrf.mxu0 }
 0x284   : > { %v2611_v5 = vadd.f32 %v2555_v57, %v2333_v6 }
 0x286   : > { %2644 = vst.msk [vmem:[%s4508_s6 + $0xa0] sm:$0xff] %vm2623_vm2, %v2611_v5  ;;  %v2695_v47 = vsel %vm2623_vm2, %v2611_v5, 0.0  ;;  %v2747_v42 = vmul.f32 %v2611_v5, %v2611_v5 }
 0x287   : > { %v2696_v39 = vadd.f32 %v2695_v47, %v2694_v45  ;;  %v2002_v33 = vpop.f32.mrf.mxu2 }
 0x288   : > { %v2798_v20 = vsel %vm2623_vm2, %v2747_v42, 0.0  ;;  %v2056_v18 = vadd.f32 %v2002_v33, %v1777_v16  ;;  %v2280_v8 = vpop.f32.mrf.mxu3  ;;  %v1726_v52 = vpop.f32.mrf.mxu1 }
 0x289   : > { %v2799_v12 = vadd.f32 %v2798_v20, %v2797_v44  ;;  %v1778_v54 = vadd.f32 %v1726_v52, %v4394_v40 }
 0x28a   : > { %v2334_v59 = vadd.f32 %v2280_v8, %v2056_v18 }
 0x28b   : > { %v2561_v23 = vpop.f32.mrf.mxu0 }
 0x28c   : > { %v2612_v62 = vadd.f32 %v2558_v37, %v2334_v59 }
 0x28e   : > { %2645 = vst.msk [vmem:[%s4508_s6 + $0xa8] sm:$0xff] %vm2623_vm2, %v2612_v62  ;;  %v2697_v15 = vsel %vm2623_vm2, %v2612_v62, 0.0  ;;  %v2748_v61 = vmul.f32 %v2612_v62, %v2612_v62 }
 0x28f   : > { %v2698_v43 = vadd.f32 %v2697_v15, %v2696_v39  ;;  %v2005_v13 = vpop.f32.mrf.mxu2 }
 0x290   : > { %v2800_v21 = vsel %vm2623_vm2, %v2748_v61, 0.0  ;;  %v2057_v24 = vadd.f32 %v2005_v13, %v1778_v54  ;;  %v2283_v10 = vpop.f32.mrf.mxu3  ;;  %v1729_v32 = vpop.f32.mrf.mxu1 }
 0x291   : > { %v2801_v55 = vadd.f32 %v2800_v21, %v2799_v12  ;;  %v1779_v22 = vadd.f32 %v1729_v32, %v4405_v63 }
 0x292   : > { %v2335_v38 = vadd.f32 %v2283_v10, %v2057_v24 }
 0x293   : > { %v2564_v56 = vpop.f32.mrf.mxu0 }
 0x294   : > { %v2613_v25 = vadd.f32 %v2561_v23, %v2335_v38 }
 0x296   : > { %2646 = vst.msk [vmem:[%s4508_s6 + $0xb0] sm:$0xff] %vm2623_vm2, %v2613_v25  ;;  %v2699_v40 = vsel %vm2623_vm2, %v2613_v25, 0.0  ;;  %v2749_v48 = vmul.f32 %v2613_v25, %v2613_v25 }
 0x297   : > { %v2700_v4 = vadd.f32 %v2699_v40, %v2698_v43  ;;  %v2008_v46 = vpop.f32.mrf.mxu2 }
 0x298   : > { %v2802_v14 = vsel %vm2623_vm2, %v2749_v48, 0.0  ;;  %v2058_v26 = vadd.f32 %v2008_v46, %v1779_v22  ;;  %v2286_v34 = vpop.f32.mrf.mxu3  ;;  %v1732_v31 = vpop.f32.mrf.mxu1 }
 0x299   : > { %v2803_v0 = vadd.f32 %v2802_v14, %v2801_v55  ;;  %v1780_v1 = vadd.f32 %v1732_v31, %v4416_v51 }
 0x29a   : > { %v2336_v58 = vadd.f32 %v2286_v34, %v2058_v26 }
 0x29b   : > { %v2567_v49 = vpop.f32.mrf.mxu0 }
 0x29c   : > { %v2614_v28 = vadd.f32 %v2564_v56, %v2336_v58 }
 0x29e   : > { %2647 = vst.msk [vmem:[%s4508_s6 + $0xb8] sm:$0xff] %vm2623_vm2, %v2614_v28  ;;  %v2701_v63 = vsel %vm2623_vm2, %v2614_v28, 0.0  ;;  %v2750_v57 = vmul.f32 %v2614_v28, %v2614_v28 }
 0x29f   : > { %v2702_v30 = vadd.f32 %v2701_v63, %v2700_v4  ;;  %v2011_v41 = vpop.f32.mrf.mxu2 }
 0x2a0   : > { %v2804_v53 = vsel %vm2623_vm2, %v2750_v57, 0.0  ;;  %v2059_v19 = vadd.f32 %v2011_v41, %v1780_v1  ;;  %v2289_v45 = vpop.f32.mrf.mxu3  ;;  %v1735_v29 = vpop.f32.mrf.mxu1 }
 0x2a1   : > { %v2805_v36 = vadd.f32 %v2804_v53, %v2803_v0  ;;  %v1781_v27 = vadd.f32 %v1735_v29, %v4427_v9 }
 0x2a2   : > { %v2337_v3 = vadd.f32 %v2289_v45, %v2059_v19 }
 0x2a3   : > { %v2570_v17 = vpop.f32.mrf.mxu0 }
 0x2a4   : > { %v2615_v44 = vadd.f32 %v2567_v49, %v2337_v3 }
 0x2a6   : > { %2648 = vst.msk [vmem:[%s4508_s6 + $0xc0] sm:$0xff] %vm2623_vm2, %v2615_v44  ;;  %v2703_v51 = vsel %vm2623_vm2, %v2615_v44, 0.0  ;;  %v2751_v6 = vmul.f32 %v2615_v44, %v2615_v44 }
 0x2a7   : > { %v2704_v37 = vadd.f32 %v2703_v51, %v2702_v30  ;;  %v2014_v5 = vpop.f32.mrf.mxu2 }
 0x2a8   : > { %v2806_v16 = vsel %vm2623_vm2, %v2751_v6, 0.0  ;;  %v2060_v47 = vadd.f32 %v2014_v5, %v1781_v27  ;;  %v2292_v42 = vpop.f32.mrf.mxu3  ;;  %v1738_v33 = vpop.f32.mrf.mxu1 }
 0x2a9   : > { %v2807_v39 = vadd.f32 %v2806_v16, %v2805_v36  ;;  %v1782_v12 = vadd.f32 %v1738_v33, %v4438_v50 }
 0x2aa   : > { %v2338_v20 = vadd.f32 %v2292_v42, %v2060_v47 }
 0x2ab   : > { %v2573_v18 = vpop.f32.mrf.mxu0 }
 0x2ac   : > { %v2616_v8 = vadd.f32 %v2570_v17, %v2338_v20 }
 0x2ae   : > { %2649 = vst.msk [vmem:[%s4508_s6 + $0xc8] sm:$0xff] %vm2623_vm2, %v2616_v8  ;;  %v2705_v9 = vsel %vm2623_vm2, %v2616_v8, 0.0  ;;  %v2752_v52 = vmul.f32 %v2616_v8, %v2616_v8 }
 0x2af   : > { %v2706_v59 = vadd.f32 %v2705_v9, %v2704_v37  ;;  %v2017_v23 = vpop.f32.mrf.mxu2 }
 0x2b0   : > { %v2808_v62 = vsel %vm2623_vm2, %v2752_v52, 0.0  ;;  %v2061_v54 = vadd.f32 %v2017_v23, %v1782_v12  ;;  %v2295_v15 = vpop.f32.mrf.mxu3  ;;  %v1741_v43 = vpop.f32.mrf.mxu1 }
 0x2b1   : > { %v2809_v61 = vadd.f32 %v2808_v62, %v2807_v39  ;;  %v1783_v10 = vadd.f32 %v1741_v43, %v4449_v60 }
 0x2b2   : > { %v2339_v13 = vadd.f32 %v2295_v15, %v2061_v54 }
 0x2b3   : > { %v2576_v21 = vpop.f32.mrf.mxu0 }
 0x2b4   : > { %v2617_v24 = vadd.f32 %v2573_v18, %v2339_v13 }
 0x2b6   : > { %2650 = vst.msk [vmem:[%s4508_s6 + $0xd0] sm:$0xff] %vm2623_vm2, %v2617_v24  ;;  %v2707_v50 = vsel %vm2623_vm2, %v2617_v24, 0.0  ;;  %v2753_v55 = vmul.f32 %v2617_v24, %v2617_v24 }
 0x2b7   : > { %v2708_v32 = vadd.f32 %v2707_v50, %v2706_v59  ;;  %v2020_v38 = vpop.f32.mrf.mxu2 }
 0x2b8   : > { %v2810_v56 = vsel %vm2623_vm2, %v2753_v55, 0.0  ;;  %v2062_v25 = vadd.f32 %v2020_v38, %v1783_v10  ;;  %v2298_v22 = vpop.f32.mrf.mxu3  ;;  %v1744_v48 = vpop.f32.mrf.mxu1 }
 0x2b9   : > { %v2811_v40 = vadd.f32 %v2810_v56, %v2809_v61  ;;  %v1784_v26 = vadd.f32 %v1744_v48, %v4460_v7 }
 0x2ba   : > { %v2340_v4 = vadd.f32 %v2298_v22, %v2062_v25 }
 0x2bb   : > { %v2579_v46 = vpop.f32.mrf.mxu0 }
 0x2bc   : > { %v2618_v14 = vadd.f32 %v2576_v21, %v2340_v4 }
 0x2be   : > { %2651 = vst.msk [vmem:[%s4508_s6 + $0xd8] sm:$0xff] %vm2623_vm2, %v2618_v14  ;;  %v2709_v60 = vsel %vm2623_vm2, %v2618_v14, 0.0  ;;  %v2754_v34 = vmul.f32 %v2618_v14, %v2618_v14 }
 0x2bf   : > { %v2710_v0 = vadd.f32 %v2709_v60, %v2708_v32  ;;  %v2023_v31 = vpop.f32.mrf.mxu2 }
 0x2c0   : > { %v2812_v58 = vsel %vm2623_vm2, %v2754_v34, 0.0  ;;  %v2063_v49 = vadd.f32 %v2023_v31, %v1784_v26  ;;  %v2301_v28 = vpop.f32.mrf.mxu3  ;;  %v1747_v63 = vpop.f32.mrf.mxu1 }
 0x2c1   : > { %v2813_v1 = vadd.f32 %v2812_v58, %v2811_v40  ;;  %v1785_v53 = vadd.f32 %v1747_v63, %v4471_v11 }
 0x2c2   : > { %v2341_v57 = vadd.f32 %v2301_v28, %v2063_v49 }
 0x2c3   : > { %v2582_v41 = vpop.f32.mrf.mxu0 }
 0x2c4   : > { %v2619_v30 = vadd.f32 %v2579_v46, %v2341_v57 }
 0x2c6   : > { %2652 = vst.msk [vmem:[%s4508_s6 + $0xe0] sm:$0xff] %vm2623_vm2, %v2619_v30  ;;  %v2711_v7 = vsel %vm2623_vm2, %v2619_v30, 0.0  ;;  %v2755_v19 = vmul.f32 %v2619_v30, %v2619_v30 }
 0x2c7   : > { %v2712_v45 = vadd.f32 %v2711_v7, %v2710_v0  ;;  %v2026_v36 = vpop.f32.mrf.mxu2 }
 0x2c8   : > { %v2814_v29 = vsel %vm2623_vm2, %v2755_v19, 0.0  ;;  %v2064_v3 = vadd.f32 %v2026_v36, %v1785_v53  ;;  %v2304_v17 = vpop.f32.mrf.mxu3  ;;  %v1750_v27 = vpop.f32.mrf.mxu1 }
 0x2c9   : > { %v2815_v44 = vadd.f32 %v2814_v29, %v2813_v1  ;;  %v1786_v37 = vadd.f32 %v1750_v27, %v4482_v35 }
 0x2ca   : > { %v2342_v51 = vadd.f32 %v2304_v17, %v2064_v3 }
 0x2cb   : > { %v2585_v42 = vpop.f32.mrf.mxu0 }
 0x2cc   : > { %v2620_v6 = vadd.f32 %v2582_v41, %v2342_v51 }
 0x2ce   : > { %2653 = vst.msk [vmem:[%s4508_s6 + $0xe8] sm:$0xff] %vm2623_vm2, %v2620_v6  ;;  %v2713_v11 = vsel %vm2623_vm2, %v2620_v6, 0.0  ;;  %v2756_v5 = vmul.f32 %v2620_v6, %v2620_v6 }
 0x2cf   : > { %v2714_v16 = vadd.f32 %v2713_v11, %v2712_v45  ;;  %v2029_v47 = vpop.f32.mrf.mxu2 }
 0x2d0   : > { %v2816_v39 = vsel %vm2623_vm2, %v2756_v5, 0.0  ;;  %v2065_v33 = vadd.f32 %v2029_v47, %v1786_v37  ;;  %v2307_v20 = vpop.f32.mrf.mxu3  ;;  %v1753_v12 = vpop.f32.mrf.mxu1 }
 0x2d1   : > { %v2817_v18 = vadd.f32 %v2816_v39, %v2815_v44  ;;  %v1787_v52 = vadd.f32 %v1753_v12, %v4493_v2 }
 0x2d2   : > { %v2343_v8 = vadd.f32 %v2307_v20, %v2065_v33 }
 0x2d3   : > { %v2588_v13 = vpop.f32.mrf.mxu0 }
 0x2d4   : > { %v2621_v9 = vadd.f32 %v2585_v42, %v2343_v8 }
 0x2d6   : > { %2654 = vst.msk [vmem:[%s4508_s6 + $0xf0] sm:$0xff] %vm2623_vm2, %v2621_v9  ;;  %v2715_v35 = vsel %vm2623_vm2, %v2621_v9, 0.0  ;;  %v2757_v59 = vmul.f32 %v2621_v9, %v2621_v9 }
 0x2d7   : > { %v2716_v23 = vadd.f32 %v2715_v35, %v2714_v16  ;;  %v2032_v62 = vpop.f32.mrf.mxu2 }
 0x2d8   : > { %v2818_v54 = vsel %vm2623_vm2, %v2757_v59, 0.0  ;;  %v2066_v15 = vadd.f32 %v2032_v62, %v1787_v52  ;;  %v2310_v61 = vpop.f32.mrf.mxu3 }
 0x2d9   : > { %v2819_v43 = vadd.f32 %v2818_v54, %v2817_v18 }
 0x2da   : > { %v2344_v21 = vadd.f32 %v2310_v61, %v2066_v15 }
 0x2dc   : > { %v2622_v24 = vadd.f32 %v2588_v13, %v2344_v21 }
 0x2de   : > { %2655 = vst.msk [vmem:[%s4508_s6 + $0xf8] sm:$0xff] %vm2623_vm2, %v2622_v24  ;;  %v2717_v2 = vsel %vm2623_vm2, %v2622_v24, 0.0  ;;  %v2758_v10 = vmul.f32 %v2622_v24, %v2622_v24 }
 0x2df   : > { %v2718_v50 = vadd.f32 %v2717_v2, %v2716_v23 }
 0x2e0   : > { %v2820_v55 = vsel %vm2623_vm2, %v2758_v10, 0.0 }
 0x2e1   : > { %v2719_v32 = vrot.slane %v2718_v50, 4  ;;  %v2821_v38 = vadd.f32 %v2820_v55, %v2819_v43 }
 0x2e3   : > { %v2720_v56 = vadd.f32 %v2719_v32, %v2718_v50  ;;  %v2822_v25 = vrot.slane %v2821_v38, 4 }
 0x2e5   : > { %v2721_v22 = vrot.slane %v2720_v56, 2  ;;  %v2823_v40 = vadd.f32 %v2822_v25, %v2821_v38 }
 0x2e7   : > { %v2722_v48 = vadd.f32 %v2721_v22, %v2720_v56  ;;  %v2824_v4 = vrot.slane %v2823_v40, 2 }
 0x2e9   : > { %v2723_v46 = vrot.slane %v2722_v48, 1  ;;  %v2825_v14 = vadd.f32 %v2824_v4, %v2823_v40 }
 0x2eb   : > { %v2724_v26 = vadd.f32 %v2723_v46, %v2722_v48  ;;  %v2826_v60 = vrot.slane %v2825_v14, 1 }
 0x2ed   : > { %2726 = vst.msk [vmem:[%s171_s17] sm:$0x1] %vm2725_vm3, %v2724_v26  ;;  %v2827_v34 = vadd.f32 %v2826_v60, %v2825_v14 }
 0x2ef   : > { %2828 = vst.msk [vmem:[%s171_s17 + $0x1] sm:$0x1] %vm2725_vm3, %v2827_v34 }
 0x2f0   : > { %3517 = shalt.err (!%p3514_p3)
}
 0x2f1   : > { %3451 = dma.vmem_to_hbm [thread:$0]  (%p3612_p5), %s2851_s19, 32, %s2853_s20, %s2835_s16  }
 0x2f2 PF: > { %p3457_p4 = scmp.ge.s32.totalorder %s3552_s15, 2  ;;  %s2872_s4 = sand.u32 1, %s3540_s12  }
 0x2f3   : > { %s2873_s6 = scalar_lea.sflag [#allocation3], %s2872_s4 }
 0x2f4   : > { %p3454_p7 = pnand %p3457_p4, %p3616_p6 }
 0x2f6   : > { %p3455_p8 = pneg %p3454_p7 }
 0x2f8   : > { %3535 = dma.done.wait (%p3455_p8), %s2873_s6, 32  }
 0x2f9   : > { %3537 = vsyncadd (%p3455_p8), %s2873_s6, 4294967264  ;;  %p14_p9 = scmp.ge.s32.totalorder %s3599_s18, 4   ;;  %s4917_s12 = smov %s3544_s13 }
 0x2fa   : > { %s4918_s13 = smov %s3548_s14  ;;  %s4919_s14 = smov %s3610_s21 }
 0x2fb   : > { %s4920_s15 = smov %s3599_s18  ;;  %16 = sbr.rel (!%p14_p9) target bundleno = 3 (0x3), region = 85 }
 0x300   :  { %2879 = vsyncpa [#allocation3], 1 }
 0x301   :  { %2881 = vsyncpa [#allocation3 + $0x1], 1 }

</bundles_post_ra>
